<compile_context>
chip_gen: v5e
topology: v5e:2x2
jax: 0.10.0
libtpu: 0.0.40
codegen_flags: <defaults>
</compile_context>

<pallas_src>
import functools

import jax
import jax.numpy as jnp
from jax.experimental import pallas as pl
from jax.experimental.pallas import tpu as pltpu


def _coded_sum_kernel(x_ref, w_ref, o_ref, *, t_dim, p_lanes, n_sub):
    # x_ref: (1, 1, T, n_sub*P), w_ref: (1, T, P) (normalization folded in),
    # o_ref: (1, 1, 1, n_sub*P).  All offsets are static & lane aligned.
    n_full = t_dim // 8
    rem = t_dim - n_full * 8
    w32 = w_ref[0].astype(jnp.float32)                       # (T, P) loaded once
    for i in range(n_sub):
        off = i * p_lanes                                    # static, % 128 == 0
        acc = None
        # Elementwise (8, P) group accumulation on the VPU ...
        for g in range(n_full):
            t0 = g * 8
            part = (x_ref[0, 0, t0:t0 + 8, off:off + p_lanes].astype(jnp.float32)
                    * w32[t0:t0 + 8, :])
            acc = part if acc is None else acc + part
        # ... then a single cross-sublane (XLU) reduction per sub-band.
        row = None if acc is None else jnp.sum(acc, axis=0, keepdims=True)
        if rem:
            t0 = n_full * 8
            tail = jnp.sum(
                x_ref[0, 0, t0:t0 + rem, off:off + p_lanes].astype(jnp.float32)
                * w32[t0:t0 + rem, :],
                axis=0, keepdims=True)
            row = tail if row is None else row + tail
        o_ref[0, 0, :, off:off + p_lanes] = row.astype(o_ref.dtype)


def _binarize(coded_weight, dtype):
    # Normal_BinarizeF.forward: 1 where w > 0 else 0 (strict >, matching the
    # PyTorch masks), then force the argmax along t to 1 so every spatial
    # position has >= 1 exposure.  (jnp.argmax tie-breaking: first maximum.)
    t = coded_weight.shape[1]
    binary = (coded_weight > 0).astype(dtype)
    onehot = jax.nn.one_hot(jnp.argmax(coded_weight, axis=1), t, axis=1, dtype=dtype)
    return jnp.maximum(binary, onehot)


def _pick_chunk_bands(n_bands, period, t_dim, x_bytes, w_bytes, o_bytes,
                      budget_bytes=24 << 20):
    # Largest divisor k of n_bands whose double-buffered working set
    # (x block + constant-size weight band + output block) fits the budget.
    best = 1
    for k in range(1, n_bands + 1):
        if n_bands % k:
            continue
        chunk = k * period
        need = (2 * t_dim * chunk * x_bytes      # double-buffered x block
                + 2 * t_dim * period * w_bytes   # double-buffered weight band
                + 2 * chunk * o_bytes)           # double-buffered output block
        if need <= budget_bytes:
            best = k
    return best


def coded_ablat_forward(x, coded_weight, *, pixel_wise_norm=False):
    """x: (B, C, T, H, W), coded_weight: (C, T, s, s) with H % s == W % s == 0.

    Returns (B, C, 1, H, W), matching CodedAblatLayer.forward.
    """
    B, C, T, H, W = x.shape
    c, t, s_pat, s_pat2 = coded_weight.shape
    assert (C, T) == (c, t) and s_pat == s_pat2
    assert H % s_pat == 0 and W % s_pat == 0

    # ---- wrapper-side glue (tiny arrays, computed once) ----
    binary = _binarize(coded_weight, jnp.float32)             # (C, T, s, s)
    # Full tiled weight is periodic along flattened S with period P = s*W;
    # build just that one band (tile the s*s pattern along W only).
    band = jnp.tile(binary, (1, 1, 1, W // s_pat))            # (C, T, s, W)
    P = s_pat * W
    band = band.reshape(C, T, P)                              # (C, T, P)
    if pixel_wise_norm:
        exposed = jnp.sum(band, axis=1, keepdims=True)        # (C, 1, P)
        # Faithful to the module's `exposed_nums[==0] = 1` (argmax one-hot
        # already guarantees exposed >= 1, so this is effectively a no-op).
        exposed = jnp.where(exposed == 0.0, 1.0, exposed)
        band = (band / exposed).astype(jnp.float32)           # keep f32 reciprocals
    else:
        # Module hard-codes 1/16 regardless of T; 0 and 2^-4 are exact in bf16,
        # halving the band's HBM/VMEM footprint for free.
        band = (band * (1.0 / 16.0)).astype(jnp.bfloat16)

    S = H * W
    n_bands = H // s_pat                                      # S = n_bands * P
    assert P % 128 == 0, "flattened weight band must be lane-aligned (s*W % 128 == 0)"

    x_bytes = jnp.dtype(x.dtype).itemsize
    w_bytes = jnp.dtype(band.dtype).itemsize
    o_bytes = x_bytes
    cb = _pick_chunk_bands(n_bands, P, T, x_bytes, w_bytes, o_bytes)
    n_chunks = n_bands // cb
    # v7x has 2 TensorCores: keep >= 2 parallel grid steps when possible.
    if B * C * n_chunks < 2 and n_bands > 1:
        for k in range(cb - 1, 0, -1):
            if n_bands % k == 0:
                cb = k
                break
        n_chunks = n_bands // cb
    chunk = cb * P

    x_flat = x.reshape(B, C, T, S)                            # contiguous reshape

    kernel = functools.partial(_coded_sum_kernel, t_dim=T, p_lanes=P, n_sub=cb)
    out_flat = pl.pallas_call(
        kernel,
        out_shape=jax.ShapeDtypeStruct((B, C, 1, S), x.dtype),
        grid_spec=pltpu.PrefetchScalarGridSpec(
            num_scalar_prefetch=0,
            # (C, B, j): weight block index is a function of the outermost,
            # slowest-varying axis only -> the band is DMA'd C times total.
            grid=(C, B, n_chunks),
            in_specs=[
                pl.BlockSpec((1, 1, T, chunk), lambda ci, b, j: (b, ci, 0, j)),
                pl.BlockSpec((1, T, P), lambda ci, b, j: (ci, 0, 0)),
            ],
            out_specs=pl.BlockSpec((1, 1, 1, chunk), lambda ci, b, j: (b, ci, 0, j)),
        ),
        compiler_params=pltpu.CompilerParams(
            dimension_semantics=("parallel", "parallel", "parallel")),
    )(x_flat, band)
    return out_flat.reshape(B, C, 1, H, W)


if __name__ == "__main__":
    key = jax.random.PRNGKey(0)
    k_w, k_x = jax.random.split(key)

    # Module defaults: t=16, s=8, init_v=0.03 -> H = W = 14*s = 112.
    # c=2 / batch=2 so both (b, c) grid axes and the (C, B, j) reorder are used.
    B, C, T, s_pat = 2, 2, 16, 8
    H = W = 14 * s_pat
    init_v = 0.03

    coded_weight = jax.random.uniform(
        k_w, (C, T, s_pat, s_pat), jnp.float32, minval=-init_v, maxval=init_v)
    x = jax.random.normal(k_x, (B, C, T, H, W), jnp.float32)

    # Pure-JAX reference of the PyTorch forward.
    bw_full = jnp.tile(_binarize(coded_weight, jnp.float32),
                       (1, 1, H // s_pat, W // s_pat))[None]   # (1, C, T, H, W)
    exposed_ref = bw_full.sum(axis=2, keepdims=True)
    exposed_ref = jnp.where(exposed_ref == 0.0, 1.0, exposed_ref)

    # pixel_wise_norm = False (module default; hard-coded 1/16, intentionally
    # faithful even though T-independent).
    out = jax.block_until_ready(
        coded_ablat_forward(x, coded_weight, pixel_wise_norm=False))
    ref = (x * bw_full).sum(axis=2, keepdims=True) * (1.0 / 16.0)
    assert out.shape == (B, C, 1, H, W)
    assert jnp.allclose(out, ref, atol=1e-5, rtol=1e-5)

    # pixel_wise_norm = True
    out_pw = jax.block_until_ready(
        coded_ablat_forward(x, coded_weight, pixel_wise_norm=True))
    ref_pw = (x * bw_full).sum(axis=2, keepdims=True) / exposed_ref
    assert jnp.allclose(out_pw, ref_pw, atol=1e-5, rtol=1e-5)

    print("KERNEL_OK")
</pallas_src>

<mosaic_0001>
module attributes {stable_mosaic.version = 11 : i64} {
  func.func @_coded_sum_kernel(%arg0: i32, %arg1: i32, %arg2: i32, %arg3: memref<1x1x16x12544xf32, #tpu.memory_space<vmem>>, %arg4: memref<1x16x896xbf16, #tpu.memory_space<vmem>>, %arg5: memref<1x1x1x12544xf32, #tpu.memory_space<vmem>>) attributes {dimension_semantics = [#tpu.dimension_semantics<parallel>, #tpu.dimension_semantics<parallel>, #tpu.dimension_semantics<parallel>], iteration_bounds = array<i64: 2, 2, 1>, scalar_prefetch = 0 : i64, scratch_operands = 0 : i64, tpu.core_type = #tpu.core_type<tc>, window_params = [{transform_indices = @transform_0, window_bounds = array<i64: 1, 1, 16, 12544>}, {transform_indices = @transform_1, window_bounds = array<i64: 1, 16, 896>}, {transform_indices = @transform_2, window_bounds = array<i64: 1, 1, 1, 12544>}]} {
    %c0 = arith.constant 0 : index
    %c0_0 = arith.constant 0 : index
    %c0_1 = arith.constant 0 : index
    %0 = vector.load %arg4[%c0, %c0_0, %c0_1] : memref<1x16x896xbf16, #tpu.memory_space<vmem>>, vector<1x16x896xbf16>
    %1 = vector.shape_cast %0 : vector<1x16x896xbf16> to vector<16x896xbf16>
    %2 = arith.extf %1 : vector<16x896xbf16> to vector<16x896xf32>
    %c0_2 = arith.constant 0 : index
    %c0_3 = arith.constant 0 : index
    %c0_4 = arith.constant 0 : index
    %c0_5 = arith.constant 0 : index
    %3 = vector.load %arg3[%c0_2, %c0_3, %c0_4, %c0_5] : memref<1x1x16x12544xf32, #tpu.memory_space<vmem>>, vector<1x1x8x896xf32>
    %4 = vector.shape_cast %3 : vector<1x1x8x896xf32> to vector<8x896xf32>
    %5 = vector.extract_strided_slice %2 {offsets = [0, 0], sizes = [8, 896], strides = [1, 1]} : vector<16x896xf32> to vector<8x896xf32>
    %6 = arith.mulf %4, %5 : vector<8x896xf32>
    %c0_6 = arith.constant 0 : index
    %c0_7 = arith.constant 0 : index
    %c8 = arith.constant 8 : index
    %c0_8 = arith.constant 0 : index
    %7 = vector.load %arg3[%c0_6, %c0_7, %c8, %c0_8] : memref<1x1x16x12544xf32, #tpu.memory_space<vmem>>, vector<1x1x8x896xf32>
    %8 = vector.shape_cast %7 : vector<1x1x8x896xf32> to vector<8x896xf32>
    %9 = vector.extract_strided_slice %2 {offsets = [8, 0], sizes = [8, 896], strides = [1, 1]} : vector<16x896xf32> to vector<8x896xf32>
    %10 = arith.mulf %8, %9 : vector<8x896xf32>
    %11 = arith.addf %6, %10 : vector<8x896xf32>
    %cst = arith.constant dense<0.000000e+00> : vector<896xf32>
    %12 = vector.multi_reduction <add>, %11, %cst [0] : vector<8x896xf32> to vector<896xf32>
    %13 = vector.shape_cast %12 : vector<896xf32> to vector<1x896xf32>
    %c0_9 = arith.constant 0 : index
    %c0_10 = arith.constant 0 : index
    %c0_11 = arith.constant 0 : index
    %c0_12 = arith.constant 0 : index
    %14 = vector.load %arg5[%c0_9, %c0_10, %c0_11, %c0_12] : memref<1x1x1x12544xf32, #tpu.memory_space<vmem>>, vector<1x1x1x896xf32>
    %15 = vector.shape_cast %14 : vector<1x1x1x896xf32> to vector<1x896xf32>
    %16 = vector.shape_cast %13 : vector<1x896xf32> to vector<1x1x1x896xf32>
    tpu.vector_store %arg5[%c0_9, %c0_10, %c0_11, %c0_12], %16 {strides = array<i32>} : memref<1x1x1x12544xf32, #tpu.memory_space<vmem>>, vector<1x1x1x896xf32>,
    %c0_13 = arith.constant 0 : index
    %c0_14 = arith.constant 0 : index
    %c0_15 = arith.constant 0 : index
    %c896 = arith.constant 896 : index
    %17 = vector.load %arg3[%c0_13, %c0_14, %c0_15, %c896] : memref<1x1x16x12544xf32, #tpu.memory_space<vmem>>, vector<1x1x8x896xf32>
    %18 = vector.shape_cast %17 : vector<1x1x8x896xf32> to vector<8x896xf32>
    %19 = vector.extract_strided_slice %2 {offsets = [0, 0], sizes = [8, 896], strides = [1, 1]} : vector<16x896xf32> to vector<8x896xf32>
    %20 = arith.mulf %18, %19 : vector<8x896xf32>
    %c0_16 = arith.constant 0 : index
    %c0_17 = arith.constant 0 : index
    %c8_18 = arith.constant 8 : index
    %c896_19 = arith.constant 896 : index
    %21 = vector.load %arg3[%c0_16, %c0_17, %c8_18, %c896_19] : memref<1x1x16x12544xf32, #tpu.memory_space<vmem>>, vector<1x1x8x896xf32>
    %22 = vector.shape_cast %21 : vector<1x1x8x896xf32> to vector<8x896xf32>
    %23 = vector.extract_strided_slice %2 {offsets = [8, 0], sizes = [8, 896], strides = [1, 1]} : vector<16x896xf32> to vector<8x896xf32>
    %24 = arith.mulf %22, %23 : vector<8x896xf32>
    %25 = arith.addf %20, %24 : vector<8x896xf32>
    %cst_20 = arith.constant dense<0.000000e+00> : vector<896xf32>
    %26 = vector.multi_reduction <add>, %25, %cst_20 [0] : vector<8x896xf32> to vector<896xf32>
    %27 = vector.shape_cast %26 : vector<896xf32> to vector<1x896xf32>
    %c0_21 = arith.constant 0 : index
    %c0_22 = arith.constant 0 : index
    %c0_23 = arith.constant 0 : index
    %c896_24 = arith.constant 896 : index
    %28 = vector.load %arg5[%c0_21, %c0_22, %c0_23, %c896_24] : memref<1x1x1x12544xf32, #tpu.memory_space<vmem>>, vector<1x1x1x896xf32>
    %29 = vector.shape_cast %28 : vector<1x1x1x896xf32> to vector<1x896xf32>
    %30 = vector.shape_cast %27 : vector<1x896xf32> to vector<1x1x1x896xf32>
    tpu.vector_store %arg5[%c0_21, %c0_22, %c0_23, %c896_24], %30 {strides = array<i32>} : memref<1x1x1x12544xf32, #tpu.memory_space<vmem>>, vector<1x1x1x896xf32>,
    %c0_25 = arith.constant 0 : index
    %c0_26 = arith.constant 0 : index
    %c0_27 = arith.constant 0 : index
    %c1792 = arith.constant 1792 : index
    %31 = vector.load %arg3[%c0_25, %c0_26, %c0_27, %c1792] : memref<1x1x16x12544xf32, #tpu.memory_space<vmem>>, vector<1x1x8x896xf32>
    %32 = vector.shape_cast %31 : vector<1x1x8x896xf32> to vector<8x896xf32>
    %33 = vector.extract_strided_slice %2 {offsets = [0, 0], sizes = [8, 896], strides = [1, 1]} : vector<16x896xf32> to vector<8x896xf32>
    %34 = arith.mulf %32, %33 : vector<8x896xf32>
    %c0_28 = arith.constant 0 : index
    %c0_29 = arith.constant 0 : index
    %c8_30 = arith.constant 8 : index
    %c1792_31 = arith.constant 1792 : index
    %35 = vector.load %arg3[%c0_28, %c0_29, %c8_30, %c1792_31] : memref<1x1x16x12544xf32, #tpu.memory_space<vmem>>, vector<1x1x8x896xf32>
    %36 = vector.shape_cast %35 : vector<1x1x8x896xf32> to vector<8x896xf32>
    %37 = vector.extract_strided_slice %2 {offsets = [8, 0], sizes = [8, 896], strides = [1, 1]} : vector<16x896xf32> to vector<8x896xf32>
    %38 = arith.mulf %36, %37 : vector<8x896xf32>
    %39 = arith.addf %34, %38 : vector<8x896xf32>
    %cst_32 = arith.constant dense<0.000000e+00> : vector<896xf32>
    %40 = vector.multi_reduction <add>, %39, %cst_32 [0] : vector<8x896xf32> to vector<896xf32>
    %41 = vector.shape_cast %40 : vector<896xf32> to vector<1x896xf32>
    %c0_33 = arith.constant 0 : index
    %c0_34 = arith.constant 0 : index
    %c0_35 = arith.constant 0 : index
    %c1792_36 = arith.constant 1792 : index
    %42 = vector.load %arg5[%c0_33, %c0_34, %c0_35, %c1792_36] : memref<1x1x1x12544xf32, #tpu.memory_space<vmem>>, vector<1x1x1x896xf32>
    %43 = vector.shape_cast %42 : vector<1x1x1x896xf32> to vector<1x896xf32>
    %44 = vector.shape_cast %41 : vector<1x896xf32> to vector<1x1x1x896xf32>
    tpu.vector_store %arg5[%c0_33, %c0_34, %c0_35, %c1792_36], %44 {strides = array<i32>} : memref<1x1x1x12544xf32, #tpu.memory_space<vmem>>, vector<1x1x1x896xf32>,
    %c0_37 = arith.constant 0 : index
    %c0_38 = arith.constant 0 : index
    %c0_39 = arith.constant 0 : index
    %c2688 = arith.constant 2688 : index
    %45 = vector.load %arg3[%c0_37, %c0_38, %c0_39, %c2688] : memref<1x1x16x12544xf32, #tpu.memory_space<vmem>>, vector<1x1x8x896xf32>
    %46 = vector.shape_cast %45 : vector<1x1x8x896xf32> to vector<8x896xf32>
    %47 = vector.extract_strided_slice %2 {offsets = [0, 0], sizes = [8, 896], strides = [1, 1]} : vector<16x896xf32> to vector<8x896xf32>
    %48 = arith.mulf %46, %47 : vector<8x896xf32>
    %c0_40 = arith.constant 0 : index
    %c0_41 = arith.constant 0 : index
    %c8_42 = arith.constant 8 : index
    %c2688_43 = arith.constant 2688 : index
    %49 = vector.load %arg3[%c0_40, %c0_41, %c8_42, %c2688_43] : memref<1x1x16x12544xf32, #tpu.memory_space<vmem>>, vector<1x1x8x896xf32>
    %50 = vector.shape_cast %49 : vector<1x1x8x896xf32> to vector<8x896xf32>
    %51 = vector.extract_strided_slice %2 {offsets = [8, 0], sizes = [8, 896], strides = [1, 1]} : vector<16x896xf32> to vector<8x896xf32>
    %52 = arith.mulf %50, %51 : vector<8x896xf32>
    %53 = arith.addf %48, %52 : vector<8x896xf32>
    %cst_44 = arith.constant dense<0.000000e+00> : vector<896xf32>
    %54 = vector.multi_reduction <add>, %53, %cst_44 [0] : vector<8x896xf32> to vector<896xf32>
    %55 = vector.shape_cast %54 : vector<896xf32> to vector<1x896xf32>
    %c0_45 = arith.constant 0 : index
    %c0_46 = arith.constant 0 : index
    %c0_47 = arith.constant 0 : index
    %c2688_48 = arith.constant 2688 : index
    %56 = vector.load %arg5[%c0_45, %c0_46, %c0_47, %c2688_48] : memref<1x1x1x12544xf32, #tpu.memory_space<vmem>>, vector<1x1x1x896xf32>
    %57 = vector.shape_cast %56 : vector<1x1x1x896xf32> to vector<1x896xf32>
    %58 = vector.shape_cast %55 : vector<1x896xf32> to vector<1x1x1x896xf32>
    tpu.vector_store %arg5[%c0_45, %c0_46, %c0_47, %c2688_48], %58 {strides = array<i32>} : memref<1x1x1x12544xf32, #tpu.memory_space<vmem>>, vector<1x1x1x896xf32>,
    %c0_49 = arith.constant 0 : index
    %c0_50 = arith.constant 0 : index
    %c0_51 = arith.constant 0 : index
    %c3584 = arith.constant 3584 : index
    %59 = vector.load %arg3[%c0_49, %c0_50, %c0_51, %c3584] : memref<1x1x16x12544xf32, #tpu.memory_space<vmem>>, vector<1x1x8x896xf32>
    %60 = vector.shape_cast %59 : vector<1x1x8x896xf32> to vector<8x896xf32>
    %61 = vector.extract_strided_slice %2 {offsets = [0, 0], sizes = [8, 896], strides = [1, 1]} : vector<16x896xf32> to vector<8x896xf32>
    %62 = arith.mulf %60, %61 : vector<8x896xf32>
    %c0_52 = arith.constant 0 : index
    %c0_53 = arith.constant 0 : index
    %c8_54 = arith.constant 8 : index
    %c3584_55 = arith.constant 3584 : index
    %63 = vector.load %arg3[%c0_52, %c0_53, %c8_54, %c3584_55] : memref<1x1x16x12544xf32, #tpu.memory_space<vmem>>, vector<1x1x8x896xf32>
    %64 = vector.shape_cast %63 : vector<1x1x8x896xf32> to vector<8x896xf32>
    %65 = vector.extract_strided_slice %2 {offsets = [8, 0], sizes = [8, 896], strides = [1, 1]} : vector<16x896xf32> to vector<8x896xf32>
    %66 = arith.mulf %64, %65 : vector<8x896xf32>
    %67 = arith.addf %62, %66 : vector<8x896xf32>
    %cst_56 = arith.constant dense<0.000000e+00> : vector<896xf32>
    %68 = vector.multi_reduction <add>, %67, %cst_56 [0] : vector<8x896xf32> to vector<896xf32>
    %69 = vector.shape_cast %68 : vector<896xf32> to vector<1x896xf32>
    %c0_57 = arith.constant 0 : index
    %c0_58 = arith.constant 0 : index
    %c0_59 = arith.constant 0 : index
    %c3584_60 = arith.constant 3584 : index
    %70 = vector.load %arg5[%c0_57, %c0_58, %c0_59, %c3584_60] : memref<1x1x1x12544xf32, #tpu.memory_space<vmem>>, vector<1x1x1x896xf32>
    %71 = vector.shape_cast %70 : vector<1x1x1x896xf32> to vector<1x896xf32>
    %72 = vector.shape_cast %69 : vector<1x896xf32> to vector<1x1x1x896xf32>
    tpu.vector_store %arg5[%c0_57, %c0_58, %c0_59, %c3584_60], %72 {strides = array<i32>} : memref<1x1x1x12544xf32, #tpu.memory_space<vmem>>, vector<1x1x1x896xf32>,
    %c0_61 = arith.constant 0 : index
    %c0_62 = arith.constant 0 : index
    %c0_63 = arith.constant 0 : index
    %c4480 = arith.constant 4480 : index
    %73 = vector.load %arg3[%c0_61, %c0_62, %c0_63, %c4480] : memref<1x1x16x12544xf32, #tpu.memory_space<vmem>>, vector<1x1x8x896xf32>
    %74 = vector.shape_cast %73 : vector<1x1x8x896xf32> to vector<8x896xf32>
    %75 = vector.extract_strided_slice %2 {offsets = [0, 0], sizes = [8, 896], strides = [1, 1]} : vector<16x896xf32> to vector<8x896xf32>
    %76 = arith.mulf %74, %75 : vector<8x896xf32>
    %c0_64 = arith.constant 0 : index
    %c0_65 = arith.constant 0 : index
    %c8_66 = arith.constant 8 : index
    %c4480_67 = arith.constant 4480 : index
    %77 = vector.load %arg3[%c0_64, %c0_65, %c8_66, %c4480_67] : memref<1x1x16x12544xf32, #tpu.memory_space<vmem>>, vector<1x1x8x896xf32>
    %78 = vector.shape_cast %77 : vector<1x1x8x896xf32> to vector<8x896xf32>
    %79 = vector.extract_strided_slice %2 {offsets = [8, 0], sizes = [8, 896], strides = [1, 1]} : vector<16x896xf32> to vector<8x896xf32>
    %80 = arith.mulf %78, %79 : vector<8x896xf32>
    %81 = arith.addf %76, %80 : vector<8x896xf32>
    %cst_68 = arith.constant dense<0.000000e+00> : vector<896xf32>
    %82 = vector.multi_reduction <add>, %81, %cst_68 [0] : vector<8x896xf32> to vector<896xf32>
    %83 = vector.shape_cast %82 : vector<896xf32> to vector<1x896xf32>
    %c0_69 = arith.constant 0 : index
    %c0_70 = arith.constant 0 : index
    %c0_71 = arith.constant 0 : index
    %c4480_72 = arith.constant 4480 : index
    %84 = vector.load %arg5[%c0_69, %c0_70, %c0_71, %c4480_72] : memref<1x1x1x12544xf32, #tpu.memory_space<vmem>>, vector<1x1x1x896xf32>
    %85 = vector.shape_cast %84 : vector<1x1x1x896xf32> to vector<1x896xf32>
    %86 = vector.shape_cast %83 : vector<1x896xf32> to vector<1x1x1x896xf32>
    tpu.vector_store %arg5[%c0_69, %c0_70, %c0_71, %c4480_72], %86 {strides = array<i32>} : memref<1x1x1x12544xf32, #tpu.memory_space<vmem>>, vector<1x1x1x896xf32>,
    %c0_73 = arith.constant 0 : index
    %c0_74 = arith.constant 0 : index
    %c0_75 = arith.constant 0 : index
    %c5376 = arith.constant 5376 : index
    %87 = vector.load %arg3[%c0_73, %c0_74, %c0_75, %c5376] : memref<1x1x16x12544xf32, #tpu.memory_space<vmem>>, vector<1x1x8x896xf32>
    %88 = vector.shape_cast %87 : vector<1x1x8x896xf32> to vector<8x896xf32>
    %89 = vector.extract_strided_slice %2 {offsets = [0, 0], sizes = [8, 896], strides = [1, 1]} : vector<16x896xf32> to vector<8x896xf32>
    %90 = arith.mulf %88, %89 : vector<8x896xf32>
    %c0_76 = arith.constant 0 : index
    %c0_77 = arith.constant 0 : index
    %c8_78 = arith.constant 8 : index
    %c5376_79 = arith.constant 5376 : index
    %91 = vector.load %arg3[%c0_76, %c0_77, %c8_78, %c5376_79] : memref<1x1x16x12544xf32, #tpu.memory_space<vmem>>, vector<1x1x8x896xf32>
    %92 = vector.shape_cast %91 : vector<1x1x8x896xf32> to vector<8x896xf32>
    %93 = vector.extract_strided_slice %2 {offsets = [8, 0], sizes = [8, 896], strides = [1, 1]} : vector<16x896xf32> to vector<8x896xf32>
    %94 = arith.mulf %92, %93 : vector<8x896xf32>
    %95 = arith.addf %90, %94 : vector<8x896xf32>
    %cst_80 = arith.constant dense<0.000000e+00> : vector<896xf32>
    %96 = vector.multi_reduction <add>, %95, %cst_80 [0] : vector<8x896xf32> to vector<896xf32>
    %97 = vector.shape_cast %96 : vector<896xf32> to vector<1x896xf32>
    %c0_81 = arith.constant 0 : index
    %c0_82 = arith.constant 0 : index
    %c0_83 = arith.constant 0 : index
    %c5376_84 = arith.constant 5376 : index
    %98 = vector.load %arg5[%c0_81, %c0_82, %c0_83, %c5376_84] : memref<1x1x1x12544xf32, #tpu.memory_space<vmem>>, vector<1x1x1x896xf32>
    %99 = vector.shape_cast %98 : vector<1x1x1x896xf32> to vector<1x896xf32>
    %100 = vector.shape_cast %97 : vector<1x896xf32> to vector<1x1x1x896xf32>
    tpu.vector_store %arg5[%c0_81, %c0_82, %c0_83, %c5376_84], %100 {strides = array<i32>} : memref<1x1x1x12544xf32, #tpu.memory_space<vmem>>, vector<1x1x1x896xf32>,
    %c0_85 = arith.constant 0 : index
    %c0_86 = arith.constant 0 : index
    %c0_87 = arith.constant 0 : index
    %c6272 = arith.constant 6272 : index
    %101 = vector.load %arg3[%c0_85, %c0_86, %c0_87, %c6272] : memref<1x1x16x12544xf32, #tpu.memory_space<vmem>>, vector<1x1x8x896xf32>
    %102 = vector.shape_cast %101 : vector<1x1x8x896xf32> to vector<8x896xf32>
    %103 = vector.extract_strided_slice %2 {offsets = [0, 0], sizes = [8, 896], strides = [1, 1]} : vector<16x896xf32> to vector<8x896xf32>
    %104 = arith.mulf %102, %103 : vector<8x896xf32>
    %c0_88 = arith.constant 0 : index
    %c0_89 = arith.constant 0 : index
    %c8_90 = arith.constant 8 : index
    %c6272_91 = arith.constant 6272 : index
    %105 = vector.load %arg3[%c0_88, %c0_89, %c8_90, %c6272_91] : memref<1x1x16x12544xf32, #tpu.memory_space<vmem>>, vector<1x1x8x896xf32>
    %106 = vector.shape_cast %105 : vector<1x1x8x896xf32> to vector<8x896xf32>
    %107 = vector.extract_strided_slice %2 {offsets = [8, 0], sizes = [8, 896], strides = [1, 1]} : vector<16x896xf32> to vector<8x896xf32>
    %108 = arith.mulf %106, %107 : vector<8x896xf32>
    %109 = arith.addf %104, %108 : vector<8x896xf32>
    %cst_92 = arith.constant dense<0.000000e+00> : vector<896xf32>
    %110 = vector.multi_reduction <add>, %109, %cst_92 [0] : vector<8x896xf32> to vector<896xf32>
    %111 = vector.shape_cast %110 : vector<896xf32> to vector<1x896xf32>
    %c0_93 = arith.constant 0 : index
    %c0_94 = arith.constant 0 : index
    %c0_95 = arith.constant 0 : index
    %c6272_96 = arith.constant 6272 : index
    %112 = vector.load %arg5[%c0_93, %c0_94, %c0_95, %c6272_96] : memref<1x1x1x12544xf32, #tpu.memory_space<vmem>>, vector<1x1x1x896xf32>
    %113 = vector.shape_cast %112 : vector<1x1x1x896xf32> to vector<1x896xf32>
    %114 = vector.shape_cast %111 : vector<1x896xf32> to vector<1x1x1x896xf32>
    tpu.vector_store %arg5[%c0_93, %c0_94, %c0_95, %c6272_96], %114 {strides = array<i32>} : memref<1x1x1x12544xf32, #tpu.memory_space<vmem>>, vector<1x1x1x896xf32>,
    %c0_97 = arith.constant 0 : index
    %c0_98 = arith.constant 0 : index
    %c0_99 = arith.constant 0 : index
    %c7168 = arith.constant 7168 : index
    %115 = vector.load %arg3[%c0_97, %c0_98, %c0_99, %c7168] : memref<1x1x16x12544xf32, #tpu.memory_space<vmem>>, vector<1x1x8x896xf32>
    %116 = vector.shape_cast %115 : vector<1x1x8x896xf32> to vector<8x896xf32>
    %117 = vector.extract_strided_slice %2 {offsets = [0, 0], sizes = [8, 896], strides = [1, 1]} : vector<16x896xf32> to vector<8x896xf32>
    %118 = arith.mulf %116, %117 : vector<8x896xf32>
    %c0_100 = arith.constant 0 : index
    %c0_101 = arith.constant 0 : index
    %c8_102 = arith.constant 8 : index
    %c7168_103 = arith.constant 7168 : index
    %119 = vector.load %arg3[%c0_100, %c0_101, %c8_102, %c7168_103] : memref<1x1x16x12544xf32, #tpu.memory_space<vmem>>, vector<1x1x8x896xf32>
    %120 = vector.shape_cast %119 : vector<1x1x8x896xf32> to vector<8x896xf32>
    %121 = vector.extract_strided_slice %2 {offsets = [8, 0], sizes = [8, 896], strides = [1, 1]} : vector<16x896xf32> to vector<8x896xf32>
    %122 = arith.mulf %120, %121 : vector<8x896xf32>
    %123 = arith.addf %118, %122 : vector<8x896xf32>
    %cst_104 = arith.constant dense<0.000000e+00> : vector<896xf32>
    %124 = vector.multi_reduction <add>, %123, %cst_104 [0] : vector<8x896xf32> to vector<896xf32>
    %125 = vector.shape_cast %124 : vector<896xf32> to vector<1x896xf32>
    %c0_105 = arith.constant 0 : index
    %c0_106 = arith.constant 0 : index
    %c0_107 = arith.constant 0 : index
    %c7168_108 = arith.constant 7168 : index
    %126 = vector.load %arg5[%c0_105, %c0_106, %c0_107, %c7168_108] : memref<1x1x1x12544xf32, #tpu.memory_space<vmem>>, vector<1x1x1x896xf32>
    %127 = vector.shape_cast %126 : vector<1x1x1x896xf32> to vector<1x896xf32>
    %128 = vector.shape_cast %125 : vector<1x896xf32> to vector<1x1x1x896xf32>
    tpu.vector_store %arg5[%c0_105, %c0_106, %c0_107, %c7168_108], %128 {strides = array<i32>} : memref<1x1x1x12544xf32, #tpu.memory_space<vmem>>, vector<1x1x1x896xf32>,
    %c0_109 = arith.constant 0 : index
    %c0_110 = arith.constant 0 : index
    %c0_111 = arith.constant 0 : index
    %c8064 = arith.constant 8064 : index
    %129 = vector.load %arg3[%c0_109, %c0_110, %c0_111, %c8064] : memref<1x1x16x12544xf32, #tpu.memory_space<vmem>>, vector<1x1x8x896xf32>
    %130 = vector.shape_cast %129 : vector<1x1x8x896xf32> to vector<8x896xf32>
    %131 = vector.extract_strided_slice %2 {offsets = [0, 0], sizes = [8, 896], strides = [1, 1]} : vector<16x896xf32> to vector<8x896xf32>
    %132 = arith.mulf %130, %131 : vector<8x896xf32>
    %c0_112 = arith.constant 0 : index
    %c0_113 = arith.constant 0 : index
    %c8_114 = arith.constant 8 : index
    %c8064_115 = arith.constant 8064 : index
    %133 = vector.load %arg3[%c0_112, %c0_113, %c8_114, %c8064_115] : memref<1x1x16x12544xf32, #tpu.memory_space<vmem>>, vector<1x1x8x896xf32>
    %134 = vector.shape_cast %133 : vector<1x1x8x896xf32> to vector<8x896xf32>
    %135 = vector.extract_strided_slice %2 {offsets = [8, 0], sizes = [8, 896], strides = [1, 1]} : vector<16x896xf32> to vector<8x896xf32>
    %136 = arith.mulf %134, %135 : vector<8x896xf32>
    %137 = arith.addf %132, %136 : vector<8x896xf32>
    %cst_116 = arith.constant dense<0.000000e+00> : vector<896xf32>
    %138 = vector.multi_reduction <add>, %137, %cst_116 [0] : vector<8x896xf32> to vector<896xf32>
    %139 = vector.shape_cast %138 : vector<896xf32> to vector<1x896xf32>
    %c0_117 = arith.constant 0 : index
    %c0_118 = arith.constant 0 : index
    %c0_119 = arith.constant 0 : index
    %c8064_120 = arith.constant 8064 : index
    %140 = vector.load %arg5[%c0_117, %c0_118, %c0_119, %c8064_120] : memref<1x1x1x12544xf32, #tpu.memory_space<vmem>>, vector<1x1x1x896xf32>
    %141 = vector.shape_cast %140 : vector<1x1x1x896xf32> to vector<1x896xf32>
    %142 = vector.shape_cast %139 : vector<1x896xf32> to vector<1x1x1x896xf32>
    tpu.vector_store %arg5[%c0_117, %c0_118, %c0_119, %c8064_120], %142 {strides = array<i32>} : memref<1x1x1x12544xf32, #tpu.memory_space<vmem>>, vector<1x1x1x896xf32>,
    %c0_121 = arith.constant 0 : index
    %c0_122 = arith.constant 0 : index
    %c0_123 = arith.constant 0 : index
    %c8960 = arith.constant 8960 : index
    %143 = vector.load %arg3[%c0_121, %c0_122, %c0_123, %c8960] : memref<1x1x16x12544xf32, #tpu.memory_space<vmem>>, vector<1x1x8x896xf32>
    %144 = vector.shape_cast %143 : vector<1x1x8x896xf32> to vector<8x896xf32>
    %145 = vector.extract_strided_slice %2 {offsets = [0, 0], sizes = [8, 896], strides = [1, 1]} : vector<16x896xf32> to vector<8x896xf32>
    %146 = arith.mulf %144, %145 : vector<8x896xf32>
    %c0_124 = arith.constant 0 : index
    %c0_125 = arith.constant 0 : index
    %c8_126 = arith.constant 8 : index
    %c8960_127 = arith.constant 8960 : index
    %147 = vector.load %arg3[%c0_124, %c0_125, %c8_126, %c8960_127] : memref<1x1x16x12544xf32, #tpu.memory_space<vmem>>, vector<1x1x8x896xf32>
    %148 = vector.shape_cast %147 : vector<1x1x8x896xf32> to vector<8x896xf32>
    %149 = vector.extract_strided_slice %2 {offsets = [8, 0], sizes = [8, 896], strides = [1, 1]} : vector<16x896xf32> to vector<8x896xf32>
    %150 = arith.mulf %148, %149 : vector<8x896xf32>
    %151 = arith.addf %146, %150 : vector<8x896xf32>
    %cst_128 = arith.constant dense<0.000000e+00> : vector<896xf32>
    %152 = vector.multi_reduction <add>, %151, %cst_128 [0] : vector<8x896xf32> to vector<896xf32>
    %153 = vector.shape_cast %152 : vector<896xf32> to vector<1x896xf32>
    %c0_129 = arith.constant 0 : index
    %c0_130 = arith.constant 0 : index
    %c0_131 = arith.constant 0 : index
    %c8960_132 = arith.constant 8960 : index
    %154 = vector.load %arg5[%c0_129, %c0_130, %c0_131, %c8960_132] : memref<1x1x1x12544xf32, #tpu.memory_space<vmem>>, vector<1x1x1x896xf32>
    %155 = vector.shape_cast %154 : vector<1x1x1x896xf32> to vector<1x896xf32>
    %156 = vector.shape_cast %153 : vector<1x896xf32> to vector<1x1x1x896xf32>
    tpu.vector_store %arg5[%c0_129, %c0_130, %c0_131, %c8960_132], %156 {strides = array<i32>} : memref<1x1x1x12544xf32, #tpu.memory_space<vmem>>, vector<1x1x1x896xf32>,
    %c0_133 = arith.constant 0 : index
    %c0_134 = arith.constant 0 : index
    %c0_135 = arith.constant 0 : index
    %c9856 = arith.constant 9856 : index
    %157 = vector.load %arg3[%c0_133, %c0_134, %c0_135, %c9856] : memref<1x1x16x12544xf32, #tpu.memory_space<vmem>>, vector<1x1x8x896xf32>
    %158 = vector.shape_cast %157 : vector<1x1x8x896xf32> to vector<8x896xf32>
    %159 = vector.extract_strided_slice %2 {offsets = [0, 0], sizes = [8, 896], strides = [1, 1]} : vector<16x896xf32> to vector<8x896xf32>
    %160 = arith.mulf %158, %159 : vector<8x896xf32>
    %c0_136 = arith.constant 0 : index
    %c0_137 = arith.constant 0 : index
    %c8_138 = arith.constant 8 : index
    %c9856_139 = arith.constant 9856 : index
    %161 = vector.load %arg3[%c0_136, %c0_137, %c8_138, %c9856_139] : memref<1x1x16x12544xf32, #tpu.memory_space<vmem>>, vector<1x1x8x896xf32>
    %162 = vector.shape_cast %161 : vector<1x1x8x896xf32> to vector<8x896xf32>
    %163 = vector.extract_strided_slice %2 {offsets = [8, 0], sizes = [8, 896], strides = [1, 1]} : vector<16x896xf32> to vector<8x896xf32>
    %164 = arith.mulf %162, %163 : vector<8x896xf32>
    %165 = arith.addf %160, %164 : vector<8x896xf32>
    %cst_140 = arith.constant dense<0.000000e+00> : vector<896xf32>
    %166 = vector.multi_reduction <add>, %165, %cst_140 [0] : vector<8x896xf32> to vector<896xf32>
    %167 = vector.shape_cast %166 : vector<896xf32> to vector<1x896xf32>
    %c0_141 = arith.constant 0 : index
    %c0_142 = arith.constant 0 : index
    %c0_143 = arith.constant 0 : index
    %c9856_144 = arith.constant 9856 : index
    %168 = vector.load %arg5[%c0_141, %c0_142, %c0_143, %c9856_144] : memref<1x1x1x12544xf32, #tpu.memory_space<vmem>>, vector<1x1x1x896xf32>
    %169 = vector.shape_cast %168 : vector<1x1x1x896xf32> to vector<1x896xf32>
    %170 = vector.shape_cast %167 : vector<1x896xf32> to vector<1x1x1x896xf32>
    tpu.vector_store %arg5[%c0_141, %c0_142, %c0_143, %c9856_144], %170 {strides = array<i32>} : memref<1x1x1x12544xf32, #tpu.memory_space<vmem>>, vector<1x1x1x896xf32>,
    %c0_145 = arith.constant 0 : index
    %c0_146 = arith.constant 0 : index
    %c0_147 = arith.constant 0 : index
    %c10752 = arith.constant 10752 : index
    %171 = vector.load %arg3[%c0_145, %c0_146, %c0_147, %c10752] : memref<1x1x16x12544xf32, #tpu.memory_space<vmem>>, vector<1x1x8x896xf32>
    %172 = vector.shape_cast %171 : vector<1x1x8x896xf32> to vector<8x896xf32>
    %173 = vector.extract_strided_slice %2 {offsets = [0, 0], sizes = [8, 896], strides = [1, 1]} : vector<16x896xf32> to vector<8x896xf32>
    %174 = arith.mulf %172, %173 : vector<8x896xf32>
    %c0_148 = arith.constant 0 : index
    %c0_149 = arith.constant 0 : index
    %c8_150 = arith.constant 8 : index
    %c10752_151 = arith.constant 10752 : index
    %175 = vector.load %arg3[%c0_148, %c0_149, %c8_150, %c10752_151] : memref<1x1x16x12544xf32, #tpu.memory_space<vmem>>, vector<1x1x8x896xf32>
    %176 = vector.shape_cast %175 : vector<1x1x8x896xf32> to vector<8x896xf32>
    %177 = vector.extract_strided_slice %2 {offsets = [8, 0], sizes = [8, 896], strides = [1, 1]} : vector<16x896xf32> to vector<8x896xf32>
    %178 = arith.mulf %176, %177 : vector<8x896xf32>
    %179 = arith.addf %174, %178 : vector<8x896xf32>
    %cst_152 = arith.constant dense<0.000000e+00> : vector<896xf32>
    %180 = vector.multi_reduction <add>, %179, %cst_152 [0] : vector<8x896xf32> to vector<896xf32>
    %181 = vector.shape_cast %180 : vector<896xf32> to vector<1x896xf32>
    %c0_153 = arith.constant 0 : index
    %c0_154 = arith.constant 0 : index
    %c0_155 = arith.constant 0 : index
    %c10752_156 = arith.constant 10752 : index
    %182 = vector.load %arg5[%c0_153, %c0_154, %c0_155, %c10752_156] : memref<1x1x1x12544xf32, #tpu.memory_space<vmem>>, vector<1x1x1x896xf32>
    %183 = vector.shape_cast %182 : vector<1x1x1x896xf32> to vector<1x896xf32>
    %184 = vector.shape_cast %181 : vector<1x896xf32> to vector<1x1x1x896xf32>
    tpu.vector_store %arg5[%c0_153, %c0_154, %c0_155, %c10752_156], %184 {strides = array<i32>} : memref<1x1x1x12544xf32, #tpu.memory_space<vmem>>, vector<1x1x1x896xf32>,
    %c0_157 = arith.constant 0 : index
    %c0_158 = arith.constant 0 : index
    %c0_159 = arith.constant 0 : index
    %c11648 = arith.constant 11648 : index
    %185 = vector.load %arg3[%c0_157, %c0_158, %c0_159, %c11648] : memref<1x1x16x12544xf32, #tpu.memory_space<vmem>>, vector<1x1x8x896xf32>
    %186 = vector.shape_cast %185 : vector<1x1x8x896xf32> to vector<8x896xf32>
    %187 = vector.extract_strided_slice %2 {offsets = [0, 0], sizes = [8, 896], strides = [1, 1]} : vector<16x896xf32> to vector<8x896xf32>
    %188 = arith.mulf %186, %187 : vector<8x896xf32>
    %c0_160 = arith.constant 0 : index
    %c0_161 = arith.constant 0 : index
    %c8_162 = arith.constant 8 : index
    %c11648_163 = arith.constant 11648 : index
    %189 = vector.load %arg3[%c0_160, %c0_161, %c8_162, %c11648_163] : memref<1x1x16x12544xf32, #tpu.memory_space<vmem>>, vector<1x1x8x896xf32>
    %190 = vector.shape_cast %189 : vector<1x1x8x896xf32> to vector<8x896xf32>
    %191 = vector.extract_strided_slice %2 {offsets = [8, 0], sizes = [8, 896], strides = [1, 1]} : vector<16x896xf32> to vector<8x896xf32>
    %192 = arith.mulf %190, %191 : vector<8x896xf32>
    %193 = arith.addf %188, %192 : vector<8x896xf32>
    %cst_164 = arith.constant dense<0.000000e+00> : vector<896xf32>
    %194 = vector.multi_reduction <add>, %193, %cst_164 [0] : vector<8x896xf32> to vector<896xf32>
    %195 = vector.shape_cast %194 : vector<896xf32> to vector<1x896xf32>
    %c0_165 = arith.constant 0 : index
    %c0_166 = arith.constant 0 : index
    %c0_167 = arith.constant 0 : index
    %c11648_168 = arith.constant 11648 : index
    %196 = vector.load %arg5[%c0_165, %c0_166, %c0_167, %c11648_168] : memref<1x1x1x12544xf32, #tpu.memory_space<vmem>>, vector<1x1x1x896xf32>
    %197 = vector.shape_cast %196 : vector<1x1x1x896xf32> to vector<1x896xf32>
    %198 = vector.shape_cast %195 : vector<1x896xf32> to vector<1x1x1x896xf32>
    tpu.vector_store %arg5[%c0_165, %c0_166, %c0_167, %c11648_168], %198 {strides = array<i32>} : memref<1x1x1x12544xf32, #tpu.memory_space<vmem>>, vector<1x1x1x896xf32>,
    return
  }
  func.func @transform_0(%arg0: i32, %arg1: i32, %arg2: i32) -> (i32, i32, i32, i32) {
    %c0_i32 = arith.constant 0 : i32
    %c0_i32_0 = arith.constant 0 : i32
    return %arg1, %arg0, %c0_i32, %arg2 : i32, i32, i32, i32
  }
  func.func @transform_1(%arg0: i32, %arg1: i32, %arg2: i32) -> (i32, i32, i32) {
    %c0_i32 = arith.constant 0 : i32
    %c0_i32_0 = arith.constant 0 : i32
    %c0_i32_1 = arith.constant 0 : i32
    return %arg0, %c0_i32, %c0_i32_0 : i32, i32, i32
  }
  func.func @transform_2(%arg0: i32, %arg1: i32, %arg2: i32) -> (i32, i32, i32, i32) {
    %c0_i32 = arith.constant 0 : i32
    %c0_i32_0 = arith.constant 0 : i32
    return %arg1, %arg0, %c0_i32, %arg2 : i32, i32, i32, i32
  }
}

</mosaic_0001>

<bundles_post_ra>
// kernel: tpu_custom_call.1
= control target key start
LH: loop header
LB: loop body
LE: loop exit
PB: predicated region body
PF: predicated region fallthrough
CT: control target
= control target key end

     0   :  { %s2971_s0 = inlined_call_operand.hbm [shape: f32[2,2,16,12544], index: 0, kind: input, shape index: {}]   ;;  %s2972_s1 = inlined_call_operand.hbm [shape: bf16[2,16,896], index: 1, kind: input, shape index: {}]   ;;  %s2973_s2 = inlined_call_operand.hbm [shape: f32[2,2,1,12544], index: 2, kind: output, shape index: {}]  }
   0x1   :  { %2978 = sst [smem:[#allocation14_spill]] %s2971_s0 }
   0x2   :  { %7 = vsyncpa [#allocation3], 0 }
   0x3   :  { %9 = vsyncpa [#allocation3 + $0x1], 0 }
   0x4   :  { %10 = vsyncpa [#allocation6], 0 }
   0x5   :  { %12 = vsyncpa [#allocation6 + $0x1], 0 }
   0x6   :  { %13 = vsyncpa [#allocation4], 0 }
   0x7   :  { %15 = vsyncpa [#allocation4 + $0x1], 0  ;;  %s2116_s9 = smov 0   ;;  %s2118_s10 = smov 0  }
   0x8   :  { %s2120_s11 = smov 0   ;;  %s2122_s12 = smov 0  }
   0x9   :  { %s2124_s13 = smov 0   ;;  %s2126_s14 = smov 0  }
   0xa   :  { %s2128_s15 = smov 0   ;;  %s2130_s16 = smov 0  }
   0xb   :  { %s2132_s17 = smov 0   ;;  %s2134_s18 = smov 0  }
   0xc   :  { %s2136_s19 = smov 0  }
   0xd LB: > { %2979 = sst [smem:[#allocation11_spill]] %s2087_s17  ;;  %s1779_s20 = sadd.s32 4294967295, %s2095_s19   ;;  %s2095_s19 = sphi %s2136_s19, %s21_s19   ;;  %s2091_s18 = sphi %s2134_s18, %s3003_s18   ;;  %s2087_s17 = sphi %s2132_s17, %s2994_s17   ;;  %s2083_s16 = sphi %s2130_s16, %s3002_s16   ;;  %s2079_s15 = sphi %s2128_s15, %s2993_s15   ;;  %s2075_s14 = sphi %s2126_s14, %s3001_s14   ;;  %s2071_s13 = sphi %s2124_s13, %s3000_s13   ;;  %s2067_s12 = sphi %s2122_s12, %s2999_s12   ;;  %s2063_s11 = sphi %s2120_s11, %s2998_s11   ;;  %s2059_s10 = sphi %s2118_s10, %s2997_s10   ;;  %s2055_s9 = sphi %s2116_s9, %s2996_s9  }
   0xe   : > { %s1780_s21 = sadd.s32 4294967294, %s2095_s19   ;;  %s36_s22 = sadd.s32 1, %s2087_s17 }
   0xf   : > { %s40_s23 = sadd.s32 1, %s2091_s18  ;;  %p38_p0 = scmp.ge.s32.totalorder %s36_s22, 2 }
  0x10   : > { %s51_s24 = sadd.s32 1, %s2075_s14  ;;  %p58_p1 = scmp.ne.s32.totalorder %s2075_s14, %s2071_s13 }
  0x11   : > { %p59_p2 = scmp.eq.s32.totalorder %s2095_s19, 0  ;;  %s3005_s22 = smov (%p38_p0, %s36_s22), 0 }
  0x12   : > { %2980 = sst [smem:[#allocation12_spill]] %s3005_s22  ;;  %s3007_s23 = smov (!%p38_p0, %s40_s23), %s2091_s18 }
  0x13   : > { %s44_s25 = ssub.s32 %s2087_s17, %s3005_s22  ;;  %p2186_p3 = por %p59_p2, %p58_p1 }
  0x14   : > { %p42_p4 = scmp.ge.s32.totalorder %s3007_s23, 2  ;;  %p64_p5 = scmp.ne.s32.totalorder %s2071_s13, %s2067_s12 }
  0x15   : > { %p2192_p6 = scmp.eq.s32.totalorder %s1779_s20, 0  ;;  %p118_p7 = scmp.eq.s32.totalorder %s1779_s20, 3 }
  0x16   : > { %s3009_s23 = smov (%p42_p4, %s3007_s23), 0  ;;  %p124_p10 = scmp.eq.s32.totalorder %s1780_s21, 3 }
  0x17   : > { %2983 = sst [smem:[#allocation13_spill]] %s3009_s23  ;;  %p2200_p8 = por %p2192_p6, %p64_p5 }
  0x18   : > { %p2204_p9 = por %p118_p7, %p58_p1  ;;  %s2210_s30 = ssub.s32 %s2091_s18, %s3009_s23 }
  0x19   : > { %s46_s3 = sor.u32 %s2210_s30, %s44_s25  ;;  %p75_p11 = scmp.eq.s32.totalorder %s2210_s30, 0 }
  0x1a   : > { %p49_p12 = scmp.eq.s32.totalorder %s46_s3, 0  ;;  %p2214_p13 = por %p124_p10, %p64_p5 }
  0x1b   : > { %p2977_p0 = scmp.lt.s32.totalorder %s2095_s19, 4  ;;  %s144_s6 = sand.u32 1, %s2075_s14  }
  0x1c   : > { %s2220_s5 = scalar_select %p49_p12, %s2075_s14, %s51_s24  }
  0x1d   : > { %s1789_s7 = smul.u32 196, %s2091_s18  ;;  %p1805_p1 = pnand %p2977_p0, %p2186_p3 }
  0x1e   : > { %s1788_s8 = smul.u32 1568, %s144_s6  ;;  %s2987_s0 = sld [smem:[#allocation14_spill]] }
  0x1f   : > { %s1790_s20 = smul.u32 392, %s2087_s17  ;;  %p1785_p3 = scmp.ge.s32.totalorder %s2095_s19, 1 }
  0x20   : > { %s148_s25 = scalar_lea.vmem [#allocation2], %s1788_s8  ;;  %s2097_s8 = smov 12544  }
  0x21   : > { %s155_s21 = sadd.s32 %s1790_s20, %s1789_s7  ;;  %s160_s3 = sshll.u32 %s148_s25, 4  ;;  %s161_s3 = int_to_ptr.vmem [resolvable:$true] %s160_s3 }
  0x22   : > { %s1783_s23 = sshll.u32 %s155_s21, 3  ;;  %s145_s7 = scalar_lea.sflag [#allocation3], %s144_s6 }
  0x23   : > { %s2098_s20 = smov 784   ;;  %p190_p4 = scmp.lt.s32.totalorder %s2095_s19, 5 }
  0x24   : > { %s157_s26 = scalar_lea.hbm %s2987_s0, %s1783_s23  ;;  %s77_s25 = sadd.s32 1, %s2063_s11 }
  0x25   : > { %s158_s17 = sshll.u32 %s157_s26, 4  ;;  %p2234_p5 = pnand %p1785_p3, %p190_p4  ;;  %s159_s17 = int_to_ptr.hbm [resolvable:$true] %s158_s17 }
  0x26   : > { %1807 = dma.hbm_to_vmem [thread:$0]  (!%p1805_p1), %s159_s17, 25088, %s161_s3, %s145_s7, %s2097_s8, %s2097_s8, %s2098_s20  }
  0x27   : > { %p84_p7 = scmp.ne.s32.totalorder %s2063_s11, %s2059_s10  ;;  %p90_p12 = scmp.ne.s32.totalorder %s2059_s10, %s2055_s9 }
  0x28   : > { %s2244_s22 = scalar_select %p75_p11, %s2063_s11, %s77_s25  }
  0x29   : > { %p86_p10 = por %p84_p7, %p59_p2  ;;  %s170_s23 = sand.u32 1, %s2063_s11  }
  0x2a   : > { %s1792_s24 = smul.u32 56, %s2091_s18  ;;  %p2254_p0 = por %p90_p12, %p2192_p6 }
  0x2b   : > { %s1791_s17 = smul.u32 56, %s170_s23  ;;  %p2990_p1 = scmp.lt.s32.totalorder %s2095_s19, 4 }
  0x2c   : > { %s179_s7 = scalar_lea.hbm %s2972_s1, %s1792_s24  ;;  %s171_s9 = scalar_lea.sflag [#allocation6], %s170_s23 }
  0x2d   : > { %s180_s8 = sshll.u32 %s179_s7, 4  ;;  %p1808_p3 = pnand %p2990_p1, %p86_p10  ;;  %s181_s8 = int_to_ptr.hbm [resolvable:$true] %s180_s8 }
  0x2e   : > { %s174_s30 = scalar_lea.vmem [#allocation5], %s1791_s17  ;;  %s2099_s25 = smov 448  }
  0x2f   : > { %s182_s20 = sshll.u32 %s174_s30, 4  ;;  %s2100_s0 = smov 28   ;;  %s183_s20 = int_to_ptr.vmem [resolvable:$true] %s182_s20 }
  0x30   : > { %1810 = dma.hbm_to_vmem [thread:$0]  (!%p1808_p3), %s181_s8, 896, %s183_s20, %s171_s9, %s2099_s25, %s2099_s25, %s2100_s0  }
  0x31   : > { %194 = sbr.rel (%p2234_p5) target bundleno = 336 (0x150), region = 28  ;;  %s2266_s27 = sand.u32 (!%p2234_p5), 1, %s2071_s13  }
  0x32   : > { %s1793_s24 = smul.u32 (!%p2234_p5), 1568, %s2266_s27  ;;  %s197_s3 = scalar_lea.sflag (!%p2234_p5), [#allocation3], %s2266_s27 }
  0x34   : > { %s2270_s26 = scalar_lea.vmem (!%p2234_p5), [#allocation2], %s1793_s24 }
  0x36   : > { %2042 = dma.done.wait (%p2200_p8), %s197_s3, 25088  }
  0x37   : > { %2044 = vsyncadd (%p2200_p8), %s197_s3, 4294942208  ;;  %s206_s0 = sand.u32 1, %s2059_s10  }
  0x38   : > { %s1794_s21 = smul.u32 56, %s206_s0  ;;  %s207_s23 = scalar_lea.sflag [#allocation6], %s206_s0 }
  0x3a   : > { %s210_s17 = scalar_lea.vmem [#allocation5], %s1794_s21 }
  0x3b   : > { %2046 = dma.done.wait (%p2254_p0), %s207_s23, 896  }
  0x3c   : > { %2048 = vsyncadd (%p2254_p0), %s207_s23, 4294966400  ;;  %v239_v0 = vld [vmem:[%s210_s17] sm:$0xff]  ;;  %v240_v1 = vld [vmem:[%s210_s17 + $0x8] sm:$0xff]  ;;  %v364_v49 = vlaneseq  ;;  %vm351_vm0 = vcmask 1040384   ;;  %vm353_vm1 = vcmask 1042434   ;;  %vm357_vm2 = vcmask 1044484  }
  0x3d   : > { %v241_v2 = vld [vmem:[%s210_s17 + $0x10] sm:$0xff]  ;;  %v242_v3 = vld [vmem:[%s210_s17 + $0x18] sm:$0xf]  ;;  %v243_v4 = vld [vmem:[%s210_s17 + $0x1c] sm:$0xff]  ;;  %v2281_v6 = vunpack.c.l.bf16 %v239_v0  ;;  %v2283_v7 = vunpack.c.h.bf16 %v239_v0  ;;  %v2285_v8 = vunpack.c.l.bf16 %v240_v1  ;;  %v2287_v9 = vunpack.c.h.bf16 %v240_v1  ;;  %s1795_s28 = smul.u32 98, %s2266_s27  ;;  %s1644_s24 = scalar_lea.sflag [#allocation4], %s2266_s27 }
  0x3e   : > { %v244_v5 = vld [vmem:[%s210_s17 + $0x24] sm:$0xff]  ;;  %v245_v10 = vld [vmem:[%s210_s17 + $0x2c] sm:$0xff]  ;;  %v246_v11 = vld [vmem:[%s210_s17 + $0x34] sm:$0xf]  ;;  %v2289_v12 = vunpack.c.l.bf16 %v241_v2  ;;  %v2291_v13 = vunpack.c.h.bf16 %v241_v2  ;;  %v2293_v14 = vunpack.c.l.bf16 %v242_v3  ;;  %v2295_v15 = vunpack.c.l.bf16 %v243_v4  ;;  %s1796_s7 = smul.u32 98, %s2083_s16  ;;  %s1989_s23 = scalar_lea.hbm %s2973_s2, 392 }
  0x3f   : > { %v261_v16 = vld [vmem:[%s2270_s26] sm:$0xff]  ;;  %v2298_v17 = vunpack.c.h.bf16 %v243_v4  ;;  %v2300_v18 = vunpack.c.l.bf16 %v244_v5  ;;  %v2302_v19 = vunpack.c.h.bf16 %v244_v5  ;;  %v2304_v20 = vunpack.c.l.bf16 %v245_v10  ;;  %v262_v21 = vld [vmem:[%s2270_s26 + $0x8] sm:$0xff]  ;;  %v263_v22 = vld [vmem:[%s2270_s26 + $0x10] sm:$0xff]  ;;  %s2388_s6 = scalar_lea.vmem [#allocation7], %s1795_s28  ;;  %s1797_s8 = smul.u32 196, %s2079_s15 }
  0x40   : > { %v264_v23 = vld [vmem:[%s2270_s26 + $0x18] sm:$0xff]  ;;  %v2309_v24 = vunpack.c.h.bf16 %v245_v10  ;;  %v2311_v25 = vunpack.c.l.bf16 %v246_v11  ;;  %v265_v26 = vld [vmem:[%s2270_s26 + $0x20] sm:$0xff]  ;;  %v266_v27 = vld [vmem:[%s2270_s26 + $0x28] sm:$0xff]  ;;  %v268_v29 = vmul.f32 %v261_v16, %v2281_v6  ;;  %v269_v30 = vmul.f32 %v262_v21, %v2283_v7  ;;  %s1660_s9 = sshll.u32 %s2388_s6, 4  ;;  %s1661_s9 = int_to_ptr.vmem [resolvable:$true] %s1660_s9 }
  0x41   : > { %v267_v28 = vld [vmem:[%s2270_s26 + $0x30] sm:$0xff]  ;;  %v270_v31 = vmul.f32 %v263_v22, %v2285_v8  ;;  %v271_v32 = vmul.f32 %v264_v23, %v2287_v9  ;;  %v272_v33 = vmul.f32 %v265_v26, %v2289_v12  ;;  %v273_v34 = vmul.f32 %v266_v27, %v2291_v13  ;;  %v276_v36 = vld [vmem:[%s2270_s26 + $0x318] sm:$0xff]  ;;  %v277_v37 = vld [vmem:[%s2270_s26 + $0x320] sm:$0xff]  ;;  %s1657_s16 = sadd.s32 %s1797_s8, %s1796_s7 }
  0x42   : > { %v275_v35 = vld [vmem:[%s2270_s26 + $0x310] sm:$0xff]  ;;  %v274_v38 = vmul.f32 %v267_v28, %v2293_v14  ;;  %v278_v39 = vld [vmem:[%s2270_s26 + $0x328] sm:$0xff]  ;;  %v280_v41 = vld [vmem:[%s2270_s26 + $0x338] sm:$0xff]  ;;  %v283_v43 = vmul.f32 %v276_v36, %v2298_v17  ;;  %v284_v44 = vmul.f32 %v277_v37, %v2300_v18  ;;  %vm355_vm3 = vcmask 1041408   ;;  %s1658_s20 = scalar_lea.hbm %s2973_s2, %s1657_s16 }
  0x43   : > { %v279_v40 = vld [vmem:[%s2270_s26 + $0x330] sm:$0xff]  ;;  %v282_v42 = vmul.f32 %v275_v35, %v2295_v15  ;;  %v281_v45 = vld [vmem:[%s2270_s26 + $0x340] sm:$0xff]  ;;  %v285_v46 = vmul.f32 %v278_v39, %v2302_v19  ;;  %v287_v48 = vmul.f32 %v280_v41, %v2309_v24  ;;  %v369_v50 = vld [vmem:[%s2270_s26 + $0x38] sm:$0xff]  ;;  %vm359_vm4 = vcmask 1045508   ;;  %s1662_s25 = sshll.u32 %s1658_s20, 4  ;;  %s1663_s25 = int_to_ptr.hbm [resolvable:$true] %s1662_s25 }
  0x44   : > { %v286_v47 = vmul.f32 %v279_v40, %v2304_v20  ;;  %v288_v51 = vmul.f32 %v281_v45, %v2311_v25  ;;  %v290_v53 = vadd.f32 %v283_v43, %v269_v30  ;;  %v291_v54 = vadd.f32 %v284_v44, %v270_v31  ;;  %v370_v55 = vld [vmem:[%s2270_s26 + $0x40] sm:$0xff]  ;;  %v371_v0 = vld [vmem:[%s2270_s26 + $0x48] sm:$0xff]  ;;  %v372_v21 = vld [vmem:[%s2270_s26 + $0x50] sm:$0xff]  ;;  %s1983_s3 = sshra.s32 %s1663_s25, 4  ;;  %s1984_s3 = int_to_ptr.hbm [resolvable:$true] %s1983_s3 }
  0x45   : > { %v289_v52 = vadd.f32 %v282_v42, %v268_v29  ;;  %v292_v56 = vadd.f32 %v285_v46, %v271_v32  ;;  %v294_v58 = vadd.f32 %v287_v48, %v273_v34  ;;  %v2340_v59 = vmul.f32 %v369_v50, %v2281_v6  ;;  %v373_v32 = vld [vmem:[%s2270_s26 + $0x58] sm:$0xff]  ;;  %v374_v41 = vld [vmem:[%s2270_s26 + $0x60] sm:$0xff]  ;;  %p1990_p11 = scmp.lt.s32.totalorder %s1984_s3, %s2973_s2 }
  0x46   : > { %v293_v57 = vadd.f32 %v286_v47, %v272_v33  ;;  %v295_v60 = vadd.f32 %v288_v51, %v274_v38  ;;  %v302_v62 = vrot.slane %v290_v53, 4  ;;  %v308_v63 = vrot.slane %v291_v54, 4 }
  0x47   : > { %v296_v61 = vrot.slane %v289_v52, 4  ;;  %v314_v1 = vrot.slane %v292_v56, 4  ;;  %v326_v3 = vrot.slane %v294_v58, 4  ;;  %v2344_v4 = vmul.f32 %v370_v55, %v2283_v7 }
  0x48   : > { %v320_v2 = vrot.slane %v293_v57, 4  ;;  %v303_v10 = vadd.f32 %v302_v62, %v290_v53  ;;  %v309_v11 = vadd.f32 %v308_v63, %v291_v54  ;;  %v332_v16 = vrot.slane %v295_v60, 4  ;;  %v384_v62 = vld [vmem:[%s2270_s26 + $0x350] sm:$0xff] }
  0x49   : > { %v297_v5 = vadd.f32 %v296_v61, %v289_v52  ;;  %v315_v22 = vadd.f32 %v314_v1, %v292_v56  ;;  %v327_v26 = vadd.f32 %v326_v3, %v294_v58  ;;  %v2348_v27 = vmul.f32 %v371_v0, %v2285_v8  ;;  %v375_v52 = vld [vmem:[%s2270_s26 + $0x68] sm:$0xff]  ;;  %v385_v3 = vld [vmem:[%s2270_s26 + $0x358] sm:$0xff] }
  0x4a   : > { %v321_v23 = vadd.f32 %v320_v2, %v293_v57  ;;  %v304_v29 = vrot.slane %v303_v10, 2  ;;  %v310_v30 = vrot.slane %v309_v11, 2  ;;  %v333_v31 = vadd.f32 %v332_v16, %v295_v60 }
  0x4b   : > { %v298_v28 = vrot.slane %v297_v5, 2  ;;  %v316_v33 = vrot.slane %v315_v22, 2  ;;  %v328_v35 = vrot.slane %v327_v26, 2  ;;  %v379_v36 = vmul.f32 %v372_v21, %v2287_v9  ;;  %v387_v21 = vld [vmem:[%s2270_s26 + $0x368] sm:$0xff] }
  0x4c   : > { %v322_v34 = vrot.slane %v321_v23, 2  ;;  %v305_v38 = vadd.f32 %v304_v29, %v303_v10  ;;  %v311_v39 = vadd.f32 %v310_v30, %v309_v11  ;;  %v334_v40 = vrot.slane %v333_v31, 2  ;;  %v389_v30 = vld [vmem:[%s2270_s26 + $0x378] sm:$0xff] }
  0x4d   : > { %v299_v37 = vadd.f32 %v298_v28, %v297_v5  ;;  %vm361_vm5 = vcmask 1043456   ;;  %v317_v42 = vadd.f32 %v316_v33, %v315_v22  ;;  %v329_v44 = vadd.f32 %v328_v35, %v327_v26  ;;  %v386_v5 = vld [vmem:[%s2270_s26 + $0x360] sm:$0xff]  ;;  %v388_v22 = vld [vmem:[%s2270_s26 + $0x370] sm:$0xff] }
  0x4e   : > { %v323_v43 = vadd.f32 %v322_v34, %v321_v23  ;;  %vm2353_vm6 = vcmp.lt.s32.totalorder %v364_v49, 896  ;;  %v380_v46 = vmul.f32 %v373_v32, %v2289_v12  ;;  %v306_v48 = vrot.slane %v305_v38, 1  ;;  %v383_v49 = vld [vmem:[%s2270_s26 + $0x348] sm:$0xff] }
  0x4f   : > { %v300_v47 = vrot.slane %v299_v37, 1  ;;  %v312_v50 = vrot.slane %v311_v39, 1  ;;  %v335_v51 = vadd.f32 %v334_v40, %v333_v31  ;;  %v318_v53 = vrot.slane %v317_v42, 1 }
  0x50   : > { %v324_v54 = vrot.slane %v323_v43, 1  ;;  %v330_v55 = vrot.slane %v329_v44, 1  ;;  %v381_v56 = vmul.f32 %v374_v41, %v2291_v13  ;;  %v307_v58 = vadd.f32 %v306_v48, %v305_v38 }
  0x51   : > { %v301_v57 = vadd.f32 %v300_v47, %v299_v37  ;;  %v313_v60 = vadd.f32 %v312_v50, %v311_v39  ;;  %v336_v61 = vrot.slane %v335_v51, 1  ;;  %v319_v63 = vadd.f32 %v318_v53, %v317_v42  ;;  %v467_v47 = vld [vmem:[%s2270_s26 + $0x70] sm:$0xff] }
  0x52   : > { %v325_v0 = vadd.f32 %v324_v54, %v323_v43  ;;  %v331_v1 = vadd.f32 %v330_v55, %v329_v44  ;;  %v382_v2 = vmul.f32 %v375_v52, %v2293_v14  ;;  %v345_v11 = vrot.slane %v307_v58, 7 }
  0x53   : > { %v337_v10 = vadd.f32 %v336_v61, %v335_v51  ;;  %v346_v16 = vrot.slane %v313_v60, 6  ;;  %v390_v23 = vmul.f32 %v383_v49, %v2295_v15  ;;  %v347_v26 = vrot.slane %v319_v63, 5  ;;  %v468_v49 = vld [vmem:[%s2270_s26 + $0x78] sm:$0xff]  ;;  %v469_v63 = vld [vmem:[%s2270_s26 + $0x80] sm:$0xff] }
  0x54   : > { %v348_v28 = vrot.slane %v325_v0, 4  ;;  %v349_v29 = vrot.slane %v331_v1, 3  ;;  %v391_v31 = vmul.f32 %v384_v62, %v2298_v17  ;;  %v352_v33 = vsel %vm351_vm0, %v301_v57, %v345_v11  ;;  %v470_v11 = vld [vmem:[%s2270_s26 + $0x88] sm:$0xff] }
  0x55   : > { %v350_v32 = vrot.slane %v337_v10, 2  ;;  %v392_v34 = vmul.f32 %v385_v3, %v2300_v18  ;;  %v393_v35 = vmul.f32 %v386_v5, %v2302_v19  ;;  %v354_v37 = vsel %vm353_vm1, %v346_v16, %v347_v26 }
  0x56   : > { %v358_v38 = vsel %vm357_vm2, %v348_v28, %v349_v29  ;;  %v394_v39 = vmul.f32 %v387_v21, %v2304_v20  ;;  %v395_v40 = vmul.f32 %v388_v22, %v2309_v24  ;;  %v356_v41 = vsel %vm355_vm3, %v352_v33, %v354_v37 }
  0x57   : > { %v360_v42 = vsel %vm359_vm4, %v358_v38, %v350_v32  ;;  %v396_v43 = vmul.f32 %v389_v30, %v2311_v25  ;;  %v397_v44 = vadd.f32 %v390_v23, %v2340_v59  ;;  %v398_v50 = vadd.f32 %v391_v31, %v2344_v4  ;;  %v471_v31 = vld [vmem:[%s2270_s26 + $0x90] sm:$0xff] }
  0x58   : > { %v362_v48 = vsel %vm361_vm5, %v356_v41, %v360_v42  ;;  %v399_v51 = vadd.f32 %v392_v34, %v2348_v27  ;;  %v400_v52 = vadd.f32 %v393_v35, %v379_v36  ;;  %v401_v53 = vadd.f32 %v394_v39, %v380_v46  ;;  %v472_v41 = vld [vmem:[%s2270_s26 + $0x98] sm:$0xff] }
  0x59   : > { %368 = vst.msk [vmem:[%s2388_s6] sm:$0x7f] %vm2353_vm6, %v362_v48  ;;  %v402_v54 = vadd.f32 %v395_v40, %v381_v56  ;;  %v403_v55 = vadd.f32 %v396_v43, %v382_v2  ;;  %v404_v59 = vrot.slane %v397_v44, 4  ;;  %v410_v57 = vrot.slane %v398_v50, 4 }
  0x5a   : > { %v416_v58 = vrot.slane %v399_v51, 4  ;;  %v422_v4 = vrot.slane %v400_v52, 4  ;;  %v2395_v27 = vmul.f32 %v467_v47, %v2281_v6  ;;  %v428_v60 = vrot.slane %v401_v53, 4  ;;  %v473_v47 = vld [vmem:[%s2270_s26 + $0xa0] sm:$0xff] }
  0x5b   : > { %v405_v36 = vadd.f32 %v404_v59, %v397_v44  ;;  %v434_v61 = vrot.slane %v402_v54, 4  ;;  %v440_v62 = vrot.slane %v403_v55, 4  ;;  %v411_v0 = vadd.f32 %v410_v57, %v398_v50 }
  0x5c   : > { %v417_v1 = vadd.f32 %v416_v58, %v399_v51  ;;  %v423_v46 = vadd.f32 %v422_v4, %v400_v52  ;;  %v2399_v56 = vmul.f32 %v468_v49, %v2283_v7  ;;  %v429_v3 = vadd.f32 %v428_v60, %v401_v53  ;;  %v482_v58 = vld [vmem:[%s2270_s26 + $0x388] sm:$0xff] }
  0x5d   : > { %v406_v2 = vrot.slane %v405_v36, 2  ;;  %v435_v5 = vadd.f32 %v434_v61, %v402_v54  ;;  %v441_v10 = vadd.f32 %v440_v62, %v403_v55  ;;  %v412_v16 = vrot.slane %v411_v0, 2  ;;  %v481_v54 = vld [vmem:[%s2270_s26 + $0x380] sm:$0xff]  ;;  %v483_v62 = vld [vmem:[%s2270_s26 + $0x390] sm:$0xff] }
  0x5e   : > { %v418_v21 = vrot.slane %v417_v1, 2  ;;  %v424_v22 = vrot.slane %v423_v46, 2  ;;  %v476_v23 = vmul.f32 %v469_v63, %v2285_v8  ;;  %v430_v28 = vrot.slane %v429_v3, 2  ;;  %v484_v63 = vld [vmem:[%s2270_s26 + $0x398] sm:$0xff] }
  0x5f   : > { %v407_v26 = vadd.f32 %v406_v2, %v405_v36  ;;  %v436_v29 = vrot.slane %v435_v5, 2  ;;  %v442_v30 = vrot.slane %v441_v10, 2  ;;  %v413_v32 = vadd.f32 %v412_v16, %v411_v0  ;;  %v485_v2 = vld [vmem:[%s2270_s26 + $0x3a0] sm:$0xff] }
  0x60   : > { %v419_v33 = vadd.f32 %v418_v21, %v417_v1  ;;  %v425_v34 = vadd.f32 %v424_v22, %v423_v46  ;;  %v477_v35 = vmul.f32 %v470_v11, %v2287_v9  ;;  %v431_v38 = vadd.f32 %v430_v28, %v429_v3  ;;  %v486_v3 = vld [vmem:[%s2270_s26 + $0x3a8] sm:$0xff]  ;;  %v487_v21 = vld [vmem:[%s2270_s26 + $0x3b0] sm:$0xff] }
  0x61   : > { %v408_v37 = vrot.slane %v407_v26, 1  ;;  %v437_v39 = vadd.f32 %v436_v29, %v435_v5  ;;  %v443_v40 = vadd.f32 %v442_v30, %v441_v10  ;;  %v414_v42 = vrot.slane %v413_v32, 1 }
  0x62   : > { %v420_v43 = vrot.slane %v419_v33, 1  ;;  %v426_v44 = vrot.slane %v425_v34, 1  ;;  %v478_v48 = vmul.f32 %v471_v31, %v2289_v12  ;;  %v432_v51 = vrot.slane %v431_v38, 1 }
  0x63   : > { %v409_v50 = vadd.f32 %v408_v37, %v407_v26  ;;  %v438_v52 = vrot.slane %v437_v39, 1  ;;  %v444_v53 = vrot.slane %v443_v40, 1  ;;  %v415_v55 = vadd.f32 %v414_v42, %v413_v32 }
  0x64   : > { %v421_v59 = vadd.f32 %v420_v43, %v419_v33  ;;  %v427_v49 = vadd.f32 %v426_v44, %v425_v34  ;;  %v479_v57 = vmul.f32 %v472_v41, %v2291_v13  ;;  %v433_v4 = vadd.f32 %v432_v51, %v431_v38  ;;  %v565_v41 = vld [vmem:[%s2270_s26 + $0xa8] sm:$0xff] }
  0x65   : > { %v439_v36 = vadd.f32 %v438_v52, %v437_v39  ;;  %v445_v60 = vadd.f32 %v444_v53, %v443_v40  ;;  %v480_v61 = vmul.f32 %v473_v47, %v2293_v14  ;;  %v453_v0 = vrot.slane %v415_v55, 7 }
  0x66   : > { %v454_v1 = vrot.slane %v421_v59, 6  ;;  %v455_v46 = vrot.slane %v427_v49, 5  ;;  %v488_v5 = vmul.f32 %v481_v54, %v2295_v15  ;;  %v456_v10 = vrot.slane %v433_v4, 4  ;;  %v566_v54 = vld [vmem:[%s2270_s26 + $0xb0] sm:$0xff] }
  0x67   : > { %v457_v11 = vrot.slane %v439_v36, 3  ;;  %v458_v16 = vrot.slane %v445_v60, 2  ;;  %v489_v22 = vmul.f32 %v482_v58, %v2298_v17  ;;  %v459_v26 = vsel %vm351_vm0, %v409_v50, %v453_v0 }
  0x68   : > { %v460_v28 = vsel %vm353_vm1, %v454_v1, %v455_v46  ;;  %v490_v29 = vmul.f32 %v483_v62, %v2300_v18  ;;  %v491_v30 = vmul.f32 %v484_v63, %v2302_v19  ;;  %v492_v33 = vmul.f32 %v485_v2, %v2304_v20  ;;  %v568_v1 = vld [vmem:[%s2270_s26 + $0xc0] sm:$0xff] }
  0x69   : > { %v461_v31 = vsel %vm355_vm3, %v459_v26, %v460_v28  ;;  %v462_v32 = vsel %vm357_vm2, %v456_v10, %v457_v11  ;;  %v493_v34 = vmul.f32 %v486_v3, %v2309_v24  ;;  %v494_v38 = vmul.f32 %v487_v21, %v2311_v25 }
  0x6a   : > { %v463_v37 = vsel %vm359_vm4, %v462_v32, %v458_v16  ;;  %v495_v39 = vadd.f32 %v488_v5, %v2395_v27  ;;  %v496_v40 = vadd.f32 %v489_v22, %v2399_v56  ;;  %v497_v43 = vadd.f32 %v490_v29, %v476_v23  ;;  %v569_v22 = vld [vmem:[%s2270_s26 + $0xc8] sm:$0xff] }
  0x6b   : > { %v464_v42 = vsel %vm361_vm5, %v461_v31, %v463_v37  ;;  %v498_v44 = vadd.f32 %v491_v30, %v477_v35  ;;  %v499_v47 = vadd.f32 %v492_v33, %v478_v48  ;;  %v500_v50 = vadd.f32 %v493_v34, %v479_v57  ;;  %v567_v48 = vld [vmem:[%s2270_s26 + $0xb8] sm:$0xff]  ;;  %v570_v37 = vld [vmem:[%s2270_s26 + $0xd0] sm:$0xff] }
  0x6c   : > { %466 = vst.msk [vmem:[%s2388_s6 + $0x7] sm:$0x7f] %vm2353_vm6, %v464_v42  ;;  %v501_v51 = vadd.f32 %v494_v38, %v480_v61  ;;  %v502_v52 = vrot.slane %v495_v39, 4  ;;  %v508_v53 = vrot.slane %v496_v40, 4  ;;  %v514_v55 = vrot.slane %v497_v43, 4 }
  0x6d   : > { %v520_v59 = vrot.slane %v498_v44, 4  ;;  %v526_v27 = vrot.slane %v499_v47, 4  ;;  %v2438_v56 = vmul.f32 %v565_v41, %v2281_v6  ;;  %v532_v35 = vrot.slane %v500_v50, 4  ;;  %v571_v41 = vld [vmem:[%s2270_s26 + $0xd8] sm:$0xff] }
  0x6e   : > { %v503_v49 = vadd.f32 %v502_v52, %v495_v39  ;;  %v509_v23 = vadd.f32 %v508_v53, %v496_v40  ;;  %v538_v58 = vrot.slane %v501_v51, 4  ;;  %v515_v4 = vadd.f32 %v514_v55, %v497_v43 }
  0x6f   : > { %v521_v36 = vadd.f32 %v520_v59, %v498_v44  ;;  %v527_v57 = vadd.f32 %v526_v27, %v499_v47  ;;  %v2442_v60 = vmul.f32 %v566_v54, %v2283_v7  ;;  %v533_v63 = vadd.f32 %v532_v35, %v500_v50  ;;  %v580_v59 = vld [vmem:[%s2270_s26 + $0x3c0] sm:$0xff] }
  0x70   : > { %v504_v61 = vrot.slane %v503_v49, 2  ;;  %v510_v62 = vrot.slane %v509_v23, 2  ;;  %v539_v0 = vadd.f32 %v538_v58, %v501_v51  ;;  %v516_v46 = vrot.slane %v515_v4, 2  ;;  %v579_v51 = vld [vmem:[%s2270_s26 + $0x3b8] sm:$0xff]  ;;  %v581_v58 = vld [vmem:[%s2270_s26 + $0x3c8] sm:$0xff] }
  0x71   : > { %v522_v2 = vrot.slane %v521_v36, 2  ;;  %v528_v3 = vrot.slane %v527_v57, 2  ;;  %v574_v5 = vmul.f32 %v567_v48, %v2285_v8  ;;  %v534_v16 = vrot.slane %v533_v63, 2  ;;  %v582_v48 = vld [vmem:[%s2270_s26 + $0x3d0] sm:$0xff] }
  0x72   : > { %v505_v10 = vadd.f32 %v504_v61, %v503_v49  ;;  %v511_v11 = vadd.f32 %v510_v62, %v509_v23  ;;  %v540_v21 = vrot.slane %v539_v0, 2  ;;  %v517_v26 = vadd.f32 %v516_v46, %v515_v4  ;;  %v583_v4 = vld [vmem:[%s2270_s26 + $0x3d8] sm:$0xff]  ;;  %v584_v62 = vld [vmem:[%s2270_s26 + $0x3e0] sm:$0xff] }
  0x73   : > { %v523_v28 = vadd.f32 %v522_v2, %v521_v36  ;;  %v529_v29 = vadd.f32 %v528_v3, %v527_v57  ;;  %v575_v30 = vmul.f32 %v568_v1, %v2287_v9  ;;  %v535_v33 = vadd.f32 %v534_v16, %v533_v63  ;;  %v585_v63 = vld [vmem:[%s2270_s26 + $0x3e8] sm:$0xff] }
  0x74   : > { %v506_v31 = vrot.slane %v505_v10, 1  ;;  %v512_v32 = vrot.slane %v511_v11, 1  ;;  %v541_v34 = vadd.f32 %v540_v21, %v539_v0  ;;  %v518_v38 = vrot.slane %v517_v26, 1 }
  0x75   : > { %v524_v39 = vrot.slane %v523_v28, 1  ;;  %v530_v40 = vrot.slane %v529_v29, 1  ;;  %v576_v42 = vmul.f32 %v569_v22, %v2289_v12  ;;  %v536_v47 = vrot.slane %v535_v33, 1 }
  0x76   : > { %v507_v43 = vadd.f32 %v506_v31, %v505_v10  ;;  %v513_v44 = vadd.f32 %v512_v32, %v511_v11  ;;  %v542_v50 = vrot.slane %v541_v34, 1  ;;  %v519_v52 = vadd.f32 %v518_v38, %v517_v26 }
  0x77   : > { %v525_v53 = vadd.f32 %v524_v39, %v523_v28  ;;  %v531_v54 = vadd.f32 %v530_v40, %v529_v29  ;;  %v577_v55 = vmul.f32 %v570_v37, %v2291_v13  ;;  %v537_v27 = vadd.f32 %v536_v47, %v535_v33  ;;  %v663_v37 = vld [vmem:[%s2270_s26 + $0xe0] sm:$0xff] }
  0x78   : > { %v543_v49 = vadd.f32 %v542_v50, %v541_v34  ;;  %v551_v23 = vrot.slane %v513_v44, 7  ;;  %v578_v35 = vmul.f32 %v571_v41, %v2293_v14  ;;  %v552_v36 = vrot.slane %v519_v52, 6 }
  0x79   : > { %v553_v57 = vrot.slane %v525_v53, 5  ;;  %v554_v61 = vrot.slane %v531_v54, 4  ;;  %v586_v0 = vmul.f32 %v579_v51, %v2295_v15  ;;  %v555_v1 = vrot.slane %v537_v27, 3  ;;  %v664_v51 = vld [vmem:[%s2270_s26 + $0xe8] sm:$0xff] }
  0x7a   : > { %v556_v46 = vrot.slane %v543_v49, 2  ;;  %v557_v2 = vsel %vm351_vm0, %v507_v43, %v551_v23  ;;  %v587_v3 = vmul.f32 %v580_v59, %v2298_v17  ;;  %v588_v11 = vmul.f32 %v581_v58, %v2300_v18 }
  0x7b   : > { %v558_v10 = vsel %vm353_vm1, %v552_v36, %v553_v57  ;;  %v589_v16 = vmul.f32 %v582_v48, %v2302_v19  ;;  %v590_v21 = vmul.f32 %v583_v4, %v2304_v20  ;;  %v560_v26 = vsel %vm357_vm2, %v554_v61, %v555_v1  ;;  %v666_v36 = vld [vmem:[%s2270_s26 + $0xf8] sm:$0xff] }
  0x7c   : > { %v559_v22 = vsel %vm355_vm3, %v557_v2, %v558_v10  ;;  %v591_v28 = vmul.f32 %v584_v62, %v2309_v24  ;;  %v592_v29 = vmul.f32 %v585_v63, %v2311_v25  ;;  %v561_v31 = vsel %vm359_vm4, %v560_v26, %v556_v46 }
  0x7d   : > { %v593_v32 = vadd.f32 %v586_v0, %v2438_v56  ;;  %v594_v33 = vadd.f32 %v587_v3, %v2442_v60  ;;  %v595_v34 = vadd.f32 %v588_v11, %v574_v5  ;;  %v562_v38 = vsel %vm361_vm5, %v559_v22, %v561_v31  ;;  %v667_v3 = vld [vmem:[%s2270_s26 + $0x100] sm:$0xff]  ;;  %v668_v31 = vld [vmem:[%s2270_s26 + $0x108] sm:$0xff] }
  0x7e   : > { %v596_v39 = vadd.f32 %v589_v16, %v575_v30  ;;  %v597_v40 = vadd.f32 %v590_v21, %v576_v42  ;;  %v598_v41 = vadd.f32 %v591_v28, %v577_v55  ;;  %564 = vst.msk [vmem:[%s2388_s6 + $0xe] sm:$0x7f] %vm2353_vm6, %v562_v38  ;;  %v599_v43 = vadd.f32 %v592_v29, %v578_v35  ;;  %v665_v55 = vld [vmem:[%s2270_s26 + $0xf0] sm:$0xff] }
  0x7f   : > { %v600_v44 = vrot.slane %v593_v32, 4  ;;  %v606_v47 = vrot.slane %v594_v33, 4  ;;  %v612_v50 = vrot.slane %v595_v34, 4  ;;  %v2481_v5 = vmul.f32 %v663_v37, %v2281_v6  ;;  %v669_v37 = vld [vmem:[%s2270_s26 + $0x110] sm:$0xff] }
  0x80   : > { %v618_v52 = vrot.slane %v596_v39, 4  ;;  %v624_v56 = vrot.slane %v597_v40, 4  ;;  %v630_v60 = vrot.slane %v598_v41, 4  ;;  %v636_v54 = vrot.slane %v599_v43, 4 }
  0x81   : > { %v601_v53 = vadd.f32 %v600_v44, %v593_v32  ;;  %v607_v30 = vadd.f32 %v606_v47, %v594_v33  ;;  %v613_v42 = vadd.f32 %v612_v50, %v595_v34  ;;  %v2485_v23 = vmul.f32 %v664_v51, %v2283_v7  ;;  %v677_v44 = vld [vmem:[%s2270_s26 + $0x3f0] sm:$0xff] }
  0x82   : > { %v619_v59 = vadd.f32 %v618_v52, %v596_v39  ;;  %v625_v27 = vadd.f32 %v624_v56, %v597_v40  ;;  %v631_v49 = vadd.f32 %v630_v60, %v598_v41  ;;  %v637_v4 = vadd.f32 %v636_v54, %v599_v43  ;;  %v678_v56 = vld [vmem:[%s2270_s26 + $0x3f8] sm:$0xff]  ;;  %v679_v60 = vld [vmem:[%s2270_s26 + $0x400] sm:$0xff] }
  0x83   : > { %v602_v35 = vrot.slane %v601_v53, 2  ;;  %v608_v58 = vrot.slane %v607_v30, 2  ;;  %v614_v48 = vrot.slane %v613_v42, 2  ;;  %v672_v63 = vmul.f32 %v665_v55, %v2285_v8  ;;  %v680_v55 = vld [vmem:[%s2270_s26 + $0x408] sm:$0xff] }
  0x84   : > { %v620_v57 = vrot.slane %v619_v59, 2  ;;  %v626_v61 = vrot.slane %v625_v27, 2  ;;  %v632_v62 = vrot.slane %v631_v49, 2  ;;  %v638_v2 = vrot.slane %v637_v4, 2 }
  0x85   : > { %v603_v0 = vadd.f32 %v602_v35, %v601_v53  ;;  %v609_v1 = vadd.f32 %v608_v58, %v607_v30  ;;  %v615_v46 = vadd.f32 %v614_v48, %v613_v42  ;;  %v673_v21 = vmul.f32 %v666_v36, %v2287_v9  ;;  %v682_v58 = vld [vmem:[%s2270_s26 + $0x418] sm:$0xff]  ;;  %v683_v48 = vld [vmem:[%s2270_s26 + $0x420] sm:$0xff] }
  0x86   : > { %v621_v10 = vadd.f32 %v620_v57, %v619_v59  ;;  %v627_v11 = vadd.f32 %v626_v61, %v625_v27  ;;  %v633_v16 = vadd.f32 %v632_v62, %v631_v49  ;;  %v639_v29 = vadd.f32 %v638_v2, %v637_v4  ;;  %v681_v59 = vld [vmem:[%s2270_s26 + $0x410] sm:$0xff] }
  0x87   : > { %v604_v22 = vrot.slane %v603_v0, 1  ;;  %v610_v26 = vrot.slane %v609_v1, 1  ;;  %v616_v28 = vrot.slane %v615_v46, 1  ;;  %v674_v38 = vmul.f32 %v667_v3, %v2289_v12 }
  0x88   : > { %v622_v32 = vrot.slane %v621_v10, 1  ;;  %v628_v33 = vrot.slane %v627_v11, 1  ;;  %v634_v34 = vrot.slane %v633_v16, 1  ;;  %v640_v43 = vrot.slane %v639_v29, 1 }
  0x89   : > { %v605_v39 = vadd.f32 %v604_v22, %v603_v0  ;;  %v611_v40 = vadd.f32 %v610_v26, %v609_v1  ;;  %v617_v41 = vadd.f32 %v616_v28, %v615_v46  ;;  %v675_v52 = vmul.f32 %v668_v31, %v2291_v13  ;;  %v761_v22 = vld [vmem:[%s2270_s26 + $0x118] sm:$0xff] }
  0x8a   : > { %v623_v47 = vadd.f32 %v622_v32, %v621_v10  ;;  %v629_v50 = vadd.f32 %v628_v33, %v627_v11  ;;  %v635_v51 = vadd.f32 %v634_v34, %v633_v16  ;;  %v641_v53 = vadd.f32 %v640_v43, %v639_v29 }
  0x8b   : > { %v649_v30 = vrot.slane %v611_v40, 7  ;;  %v650_v42 = vrot.slane %v617_v41, 6  ;;  %v676_v54 = vmul.f32 %v669_v37, %v2293_v14  ;;  %v684_v4 = vmul.f32 %v677_v44, %v2295_v15 }
  0x8c   : > { %v651_v27 = vrot.slane %v623_v47, 5  ;;  %v652_v49 = vrot.slane %v629_v50, 4  ;;  %v653_v35 = vrot.slane %v635_v51, 3  ;;  %v654_v36 = vrot.slane %v641_v53, 2 }
  0x8d   : > { %v655_v57 = vsel %vm351_vm0, %v605_v39, %v649_v30  ;;  %v685_v61 = vmul.f32 %v678_v56, %v2298_v17  ;;  %v686_v62 = vmul.f32 %v679_v60, %v2300_v18  ;;  %v687_v46 = vmul.f32 %v680_v55, %v2302_v19  ;;  %v762_v39 = vld [vmem:[%s2270_s26 + $0x120] sm:$0xff] }
  0x8e   : > { %v656_v0 = vsel %vm353_vm1, %v650_v42, %v651_v27  ;;  %v658_v1 = vsel %vm357_vm2, %v652_v49, %v653_v35  ;;  %v688_v2 = vmul.f32 %v681_v59, %v2304_v20  ;;  %v689_v11 = vmul.f32 %v682_v58, %v2309_v24  ;;  %v764_v42 = vld [vmem:[%s2270_s26 + $0x130] sm:$0xff] }
  0x8f   : > { %v657_v3 = vsel %vm355_vm3, %v655_v57, %v656_v0  ;;  %v659_v10 = vsel %vm359_vm4, %v658_v1, %v654_v36  ;;  %v690_v16 = vmul.f32 %v683_v48, %v2311_v25  ;;  %v691_v28 = vadd.f32 %v684_v4, %v2481_v5  ;;  %v765_v4 = vld [vmem:[%s2270_s26 + $0x138] sm:$0xff] }
  0x90   : > { %v660_v26 = vsel %vm361_vm5, %v657_v3, %v659_v10  ;;  %v692_v29 = vadd.f32 %v685_v61, %v2485_v23  ;;  %v693_v31 = vadd.f32 %v686_v62, %v672_v63  ;;  %v694_v32 = vadd.f32 %v687_v46, %v673_v21  ;;  %v763_v63 = vld [vmem:[%s2270_s26 + $0x128] sm:$0xff]  ;;  %v766_v3 = vld [vmem:[%s2270_s26 + $0x140] sm:$0xff] }
  0x91   : > { %662 = vst.msk [vmem:[%s2388_s6 + $0x15] sm:$0x7f] %vm2353_vm6, %v660_v26  ;;  %v695_v33 = vadd.f32 %v688_v2, %v674_v38  ;;  %v696_v34 = vadd.f32 %v689_v11, %v675_v52  ;;  %v697_v37 = vadd.f32 %v690_v16, %v676_v54  ;;  %v698_v40 = vrot.slane %v691_v28, 4 }
  0x92   : > { %v704_v41 = vrot.slane %v692_v29, 4  ;;  %v710_v43 = vrot.slane %v693_v31, 4  ;;  %v2524_v44 = vmul.f32 %v761_v22, %v2281_v6  ;;  %v716_v5 = vrot.slane %v694_v32, 4 }
  0x93   : > { %v722_v47 = vrot.slane %v695_v33, 4  ;;  %v728_v23 = vrot.slane %v696_v34, 4  ;;  %v734_v50 = vrot.slane %v697_v37, 4  ;;  %v699_v51 = vadd.f32 %v698_v40, %v691_v28 }
  0x94   : > { %v705_v56 = vadd.f32 %v704_v41, %v692_v29  ;;  %v711_v21 = vadd.f32 %v710_v43, %v693_v31  ;;  %v2528_v38 = vmul.f32 %v762_v39, %v2283_v7  ;;  %v717_v52 = vadd.f32 %v716_v5, %v694_v32  ;;  %v767_v32 = vld [vmem:[%s2270_s26 + $0x148] sm:$0xff] }
  0x95   : > { %v723_v60 = vadd.f32 %v722_v47, %v695_v33  ;;  %v729_v53 = vadd.f32 %v728_v23, %v696_v34  ;;  %v735_v30 = vadd.f32 %v734_v50, %v697_v37  ;;  %v700_v54 = vrot.slane %v699_v51, 2  ;;  %v775_v33 = vld [vmem:[%s2270_s26 + $0x428] sm:$0xff]  ;;  %v776_v23 = vld [vmem:[%s2270_s26 + $0x430] sm:$0xff]  ;;  %v777_v50 = vld [vmem:[%s2270_s26 + $0x438] sm:$0xff] }
  0x96   : > { %v706_v55 = vrot.slane %v705_v56, 2  ;;  %v712_v59 = vrot.slane %v711_v21, 2  ;;  %v770_v27 = vmul.f32 %v763_v63, %v2285_v8  ;;  %v718_v49 = vrot.slane %v717_v52, 2  ;;  %v778_v63 = vld [vmem:[%s2270_s26 + $0x440] sm:$0xff] }
  0x97   : > { %v724_v35 = vrot.slane %v723_v60, 2  ;;  %v730_v58 = vrot.slane %v729_v53, 2  ;;  %v736_v48 = vrot.slane %v735_v30, 2  ;;  %v701_v36 = vadd.f32 %v700_v54, %v699_v51 }
  0x98   : > { %v707_v57 = vadd.f32 %v706_v55, %v705_v56  ;;  %v713_v61 = vadd.f32 %v712_v59, %v711_v21  ;;  %v771_v62 = vmul.f32 %v764_v42, %v2287_v9  ;;  %v719_v0 = vadd.f32 %v718_v49, %v717_v52  ;;  %v779_v52 = vld [vmem:[%s2270_s26 + $0x448] sm:$0xff]  ;;  %v781_v59 = vld [vmem:[%s2270_s26 + $0x458] sm:$0xff] }
  0x99   : > { %v725_v1 = vadd.f32 %v724_v35, %v723_v60  ;;  %v731_v46 = vadd.f32 %v730_v58, %v729_v53  ;;  %v737_v2 = vadd.f32 %v736_v48, %v735_v30  ;;  %v702_v10 = vrot.slane %v701_v36, 1  ;;  %v780_v60 = vld [vmem:[%s2270_s26 + $0x450] sm:$0xff] }
  0x9a   : > { %v708_v11 = vrot.slane %v707_v57, 1  ;;  %v714_v16 = vrot.slane %v713_v61, 1  ;;  %v772_v22 = vmul.f32 %v765_v4, %v2289_v12  ;;  %v720_v26 = vrot.slane %v719_v0, 1 }
  0x9b   : > { %v726_v28 = vrot.slane %v725_v1, 1  ;;  %v732_v29 = vrot.slane %v731_v46, 1  ;;  %v738_v31 = vrot.slane %v737_v2, 1  ;;  %v703_v34 = vadd.f32 %v702_v10, %v701_v36 }
  0x9c   : > { %v709_v37 = vadd.f32 %v708_v11, %v707_v57  ;;  %v715_v39 = vadd.f32 %v714_v16, %v713_v61  ;;  %v773_v40 = vmul.f32 %v766_v3, %v2291_v13  ;;  %v721_v41 = vadd.f32 %v720_v26, %v719_v0  ;;  %v859_v3 = vld [vmem:[%s2270_s26 + $0x150] sm:$0xff] }
  0x9d   : > { %v727_v43 = vadd.f32 %v726_v28, %v725_v1  ;;  %v733_v5 = vadd.f32 %v732_v29, %v731_v46  ;;  %v739_v47 = vadd.f32 %v738_v31, %v737_v2  ;;  %v774_v21 = vmul.f32 %v767_v32, %v2293_v14 }
  0x9e   : > { %v747_v51 = vrot.slane %v709_v37, 7  ;;  %v748_v56 = vrot.slane %v715_v39, 6  ;;  %v782_v53 = vmul.f32 %v775_v33, %v2295_v15  ;;  %v749_v30 = vrot.slane %v721_v41, 5  ;;  %v860_v33 = vld [vmem:[%s2270_s26 + $0x158] sm:$0xff] }
  0x9f   : > { %v750_v42 = vrot.slane %v727_v43, 4  ;;  %v751_v54 = vrot.slane %v733_v5, 3  ;;  %v752_v55 = vrot.slane %v739_v47, 2  ;;  %v783_v35 = vmul.f32 %v776_v23, %v2298_v17 }
  0xa0   : > { %v753_v49 = vsel %vm351_vm0, %v703_v34, %v747_v51  ;;  %v784_v58 = vmul.f32 %v777_v50, %v2300_v18  ;;  %v785_v48 = vmul.f32 %v778_v63, %v2302_v19  ;;  %v754_v4 = vsel %vm353_vm1, %v748_v56, %v749_v30  ;;  %v862_v56 = vld [vmem:[%s2270_s26 + $0x168] sm:$0xff] }
  0xa1   : > { %v756_v36 = vsel %vm357_vm2, %v750_v42, %v751_v54  ;;  %v786_v57 = vmul.f32 %v779_v52, %v2304_v20  ;;  %v787_v61 = vmul.f32 %v780_v60, %v2309_v24  ;;  %v755_v0 = vsel %vm355_vm3, %v753_v49, %v754_v4 }
  0xa2   : > { %v757_v1 = vsel %vm359_vm4, %v756_v36, %v752_v55  ;;  %v788_v46 = vmul.f32 %v781_v59, %v2311_v25  ;;  %v789_v2 = vadd.f32 %v782_v53, %v2524_v44  ;;  %v790_v11 = vadd.f32 %v783_v35, %v2528_v38  ;;  %v863_v59 = vld [vmem:[%s2270_s26 + $0x170] sm:$0xff] }
  0xa3   : > { %v758_v10 = vsel %vm361_vm5, %v755_v0, %v757_v1  ;;  %v791_v16 = vadd.f32 %v784_v58, %v770_v27  ;;  %v792_v26 = vadd.f32 %v785_v48, %v771_v62  ;;  %v793_v28 = vadd.f32 %v786_v57, %v772_v22  ;;  %v861_v62 = vld [vmem:[%s2270_s26 + $0x160] sm:$0xff]  ;;  %v864_v0 = vld [vmem:[%s2270_s26 + $0x178] sm:$0xff] }
  0xa4   : > { %760 = vst.msk [vmem:[%s2388_s6 + $0x1c] sm:$0x7f] %vm2353_vm6, %v758_v10  ;;  %v794_v29 = vadd.f32 %v787_v61, %v773_v40  ;;  %v795_v31 = vadd.f32 %v788_v46, %v774_v21  ;;  %v796_v32 = vrot.slane %v789_v2, 4  ;;  %v802_v34 = vrot.slane %v790_v11, 4 }
  0xa5   : > { %v808_v37 = vrot.slane %v791_v16, 4  ;;  %v814_v44 = vrot.slane %v792_v26, 4  ;;  %v2567_v39 = vmul.f32 %v859_v3, %v2281_v6  ;;  %v820_v38 = vrot.slane %v793_v28, 4  ;;  %v865_v3 = vld [vmem:[%s2270_s26 + $0x180] sm:$0xff] }
  0xa6   : > { %v797_v41 = vadd.f32 %v796_v32, %v789_v2  ;;  %v826_v27 = vrot.slane %v794_v29, 4  ;;  %v832_v43 = vrot.slane %v795_v31, 4  ;;  %v803_v5 = vadd.f32 %v802_v34, %v790_v11 }
  0xa7   : > { %v809_v47 = vadd.f32 %v808_v37, %v791_v16  ;;  %v815_v22 = vadd.f32 %v814_v44, %v792_v26  ;;  %v2571_v40 = vmul.f32 %v860_v33, %v2283_v7  ;;  %v821_v50 = vadd.f32 %v820_v38, %v793_v28  ;;  %v874_v37 = vld [vmem:[%s2270_s26 + $0x468] sm:$0xff] }
  0xa8   : > { %v798_v23 = vrot.slane %v797_v41, 2  ;;  %v827_v63 = vadd.f32 %v826_v27, %v794_v29  ;;  %v833_v51 = vadd.f32 %v832_v43, %v795_v31  ;;  %v804_v21 = vrot.slane %v803_v5, 2  ;;  %v873_v29 = vld [vmem:[%s2270_s26 + $0x460] sm:$0xff]  ;;  %v875_v43 = vld [vmem:[%s2270_s26 + $0x470] sm:$0xff] }
  0xa9   : > { %v810_v52 = vrot.slane %v809_v47, 2  ;;  %v816_v60 = vrot.slane %v815_v22, 2  ;;  %v868_v53 = vmul.f32 %v861_v62, %v2285_v8  ;;  %v822_v42 = vrot.slane %v821_v50, 2  ;;  %v876_v62 = vld [vmem:[%s2270_s26 + $0x478] sm:$0xff] }
  0xaa   : > { %v799_v30 = vadd.f32 %v798_v23, %v797_v41  ;;  %v828_v54 = vrot.slane %v827_v63, 2  ;;  %v834_v55 = vrot.slane %v833_v51, 2  ;;  %v805_v49 = vadd.f32 %v804_v21, %v803_v5  ;;  %v877_v23 = vld [vmem:[%s2270_s26 + $0x480] sm:$0xff] }
  0xab   : > { %v811_v35 = vadd.f32 %v810_v52, %v809_v47  ;;  %v817_v58 = vadd.f32 %v816_v60, %v815_v22  ;;  %v869_v48 = vmul.f32 %v862_v56, %v2287_v9  ;;  %v823_v36 = vadd.f32 %v822_v42, %v821_v50  ;;  %v878_v50 = vld [vmem:[%s2270_s26 + $0x488] sm:$0xff]  ;;  %v879_v52 = vld [vmem:[%s2270_s26 + $0x490] sm:$0xff] }
  0xac   : > { %v800_v4 = vrot.slane %v799_v30, 1  ;;  %v829_v57 = vadd.f32 %v828_v54, %v827_v63  ;;  %v835_v61 = vadd.f32 %v834_v55, %v833_v51  ;;  %v806_v1 = vrot.slane %v805_v49, 1 }
  0xad   : > { %v812_v46 = vrot.slane %v811_v35, 1  ;;  %v818_v2 = vrot.slane %v817_v58, 1  ;;  %v870_v10 = vmul.f32 %v863_v59, %v2289_v12  ;;  %v824_v16 = vrot.slane %v823_v36, 1 }
  0xae   : > { %v801_v11 = vadd.f32 %v800_v4, %v799_v30  ;;  %v830_v26 = vrot.slane %v829_v57, 1  ;;  %v836_v28 = vrot.slane %v835_v61, 1  ;;  %v807_v31 = vadd.f32 %v806_v1, %v805_v49 }
  0xaf   : > { %v813_v32 = vadd.f32 %v812_v46, %v811_v35  ;;  %v819_v33 = vadd.f32 %v818_v2, %v817_v58  ;;  %v871_v34 = vmul.f32 %v864_v0, %v2291_v13  ;;  %v825_v44 = vadd.f32 %v824_v16, %v823_v36  ;;  %v957_v0 = vld [vmem:[%s2270_s26 + $0x188] sm:$0xff] }
  0xb0   : > { %v831_v41 = vadd.f32 %v830_v26, %v829_v57  ;;  %v837_v38 = vadd.f32 %v836_v28, %v835_v61  ;;  %v872_v27 = vmul.f32 %v865_v3, %v2293_v14  ;;  %v845_v5 = vrot.slane %v807_v31, 7 }
  0xb1   : > { %v846_v47 = vrot.slane %v813_v32, 6  ;;  %v847_v22 = vrot.slane %v819_v33, 5  ;;  %v880_v63 = vmul.f32 %v873_v29, %v2295_v15  ;;  %v848_v51 = vrot.slane %v825_v44, 4  ;;  %v958_v29 = vld [vmem:[%s2270_s26 + $0x190] sm:$0xff] }
  0xb2   : > { %v849_v56 = vrot.slane %v831_v41, 3  ;;  %v850_v21 = vrot.slane %v837_v38, 2  ;;  %v881_v60 = vmul.f32 %v874_v37, %v2298_v17  ;;  %v851_v30 = vsel %vm351_vm0, %v801_v11, %v845_v5 }
  0xb3   : > { %v852_v42 = vsel %vm353_vm1, %v846_v47, %v847_v22  ;;  %v882_v54 = vmul.f32 %v875_v43, %v2300_v18  ;;  %v883_v55 = vmul.f32 %v876_v62, %v2302_v19  ;;  %v884_v35 = vmul.f32 %v877_v23, %v2304_v20  ;;  %v960_v47 = vld [vmem:[%s2270_s26 + $0x1a0] sm:$0xff] }
  0xb4   : > { %v853_v59 = vsel %vm355_vm3, %v851_v30, %v852_v42  ;;  %v854_v49 = vsel %vm357_vm2, %v848_v51, %v849_v56  ;;  %v885_v58 = vmul.f32 %v878_v50, %v2309_v24  ;;  %v886_v36 = vmul.f32 %v879_v52, %v2311_v25 }
  0xb5   : > { %v855_v4 = vsel %vm359_vm4, %v854_v49, %v850_v21  ;;  %v887_v57 = vadd.f32 %v880_v63, %v2567_v39  ;;  %v888_v61 = vadd.f32 %v881_v60, %v2571_v40  ;;  %v889_v46 = vadd.f32 %v882_v54, %v868_v53  ;;  %v961_v60 = vld [vmem:[%s2270_s26 + $0x1a8] sm:$0xff] }
  0xb6   : > { %v856_v1 = vsel %vm361_vm5, %v853_v59, %v855_v4  ;;  %v890_v2 = vadd.f32 %v883_v55, %v869_v48  ;;  %v891_v3 = vadd.f32 %v884_v35, %v870_v10  ;;  %v892_v11 = vadd.f32 %v885_v58, %v871_v34  ;;  %v959_v10 = vld [vmem:[%s2270_s26 + $0x198] sm:$0xff]  ;;  %v962_v4 = vld [vmem:[%s2270_s26 + $0x1b0] sm:$0xff] }
  0xb7   : > { %858 = vst.msk [vmem:[%s2388_s6 + $0x23] sm:$0x7f] %vm2353_vm6, %v856_v1  ;;  %v893_v16 = vadd.f32 %v886_v36, %v872_v27  ;;  %v894_v26 = vrot.slane %v887_v57, 4  ;;  %v900_v28 = vrot.slane %v888_v61, 4  ;;  %v906_v31 = vrot.slane %v889_v46, 4 }
  0xb8   : > { %v912_v32 = vrot.slane %v890_v2, 4  ;;  %v918_v39 = vrot.slane %v891_v3, 4  ;;  %v2610_v40 = vmul.f32 %v957_v0, %v2281_v6  ;;  %v924_v48 = vrot.slane %v892_v11, 4  ;;  %v963_v0 = vld [vmem:[%s2270_s26 + $0x1b8] sm:$0xff] }
  0xb9   : > { %v895_v33 = vadd.f32 %v894_v26, %v887_v57  ;;  %v901_v53 = vadd.f32 %v900_v28, %v888_v61  ;;  %v930_v37 = vrot.slane %v893_v16, 4  ;;  %v907_v44 = vadd.f32 %v906_v31, %v889_v46 }
  0xba   : > { %v913_v41 = vadd.f32 %v912_v32, %v890_v2  ;;  %v919_v34 = vadd.f32 %v918_v39, %v891_v3  ;;  %v2614_v38 = vmul.f32 %v958_v29, %v2283_v7  ;;  %v925_v62 = vadd.f32 %v924_v48, %v892_v11  ;;  %v972_v32 = vld [vmem:[%s2270_s26 + $0x4a0] sm:$0xff] }
  0xbb   : > { %v896_v27 = vrot.slane %v895_v33, 2  ;;  %v902_v43 = vrot.slane %v901_v53, 2  ;;  %v931_v5 = vadd.f32 %v930_v37, %v893_v16  ;;  %v908_v22 = vrot.slane %v907_v44, 2  ;;  %v971_v16 = vld [vmem:[%s2270_s26 + $0x498] sm:$0xff]  ;;  %v973_v37 = vld [vmem:[%s2270_s26 + $0x4a8] sm:$0xff] }
  0xbc   : > { %v914_v23 = vrot.slane %v913_v41, 2  ;;  %v920_v50 = vrot.slane %v919_v34, 2  ;;  %v966_v63 = vmul.f32 %v959_v10, %v2285_v8  ;;  %v926_v21 = vrot.slane %v925_v62, 2  ;;  %v974_v10 = vld [vmem:[%s2270_s26 + $0x4b0] sm:$0xff] }
  0xbd   : > { %v897_v51 = vadd.f32 %v896_v27, %v895_v33  ;;  %v903_v56 = vadd.f32 %v902_v43, %v901_v53  ;;  %v932_v52 = vrot.slane %v931_v5, 2  ;;  %v909_v30 = vadd.f32 %v908_v22, %v907_v44  ;;  %v975_v44 = vld [vmem:[%s2270_s26 + $0x4b8] sm:$0xff]  ;;  %v976_v43 = vld [vmem:[%s2270_s26 + $0x4c0] sm:$0xff] }
  0xbe   : > { %v915_v42 = vadd.f32 %v914_v23, %v913_v41  ;;  %v921_v54 = vadd.f32 %v920_v50, %v919_v34  ;;  %v967_v55 = vmul.f32 %v960_v47, %v2287_v9  ;;  %v927_v35 = vadd.f32 %v926_v21, %v925_v62  ;;  %v977_v62 = vld [vmem:[%s2270_s26 + $0x4c8] sm:$0xff] }
  0xbf   : > { %v898_v59 = vrot.slane %v897_v51, 1  ;;  %v904_v49 = vrot.slane %v903_v56, 1  ;;  %v933_v58 = vadd.f32 %v932_v52, %v931_v5  ;;  %v910_v36 = vrot.slane %v909_v30, 1 }
  0xc0   : > { %v916_v57 = vrot.slane %v915_v42, 1  ;;  %v922_v61 = vrot.slane %v921_v54, 1  ;;  %v968_v1 = vmul.f32 %v961_v60, %v2289_v12  ;;  %v928_v3 = vrot.slane %v927_v35, 1 }
  0xc1   : > { %v899_v46 = vadd.f32 %v898_v59, %v897_v51  ;;  %v905_v2 = vadd.f32 %v904_v49, %v903_v56  ;;  %v934_v11 = vrot.slane %v933_v58, 1  ;;  %v911_v26 = vadd.f32 %v910_v36, %v909_v30 }
  0xc2   : > { %v917_v28 = vadd.f32 %v916_v57, %v915_v42  ;;  %v923_v29 = vadd.f32 %v922_v61, %v921_v54  ;;  %v969_v31 = vmul.f32 %v962_v4, %v2291_v13  ;;  %v929_v39 = vadd.f32 %v928_v3, %v927_v35  ;;  %v1055_v4 = vld [vmem:[%s2270_s26 + $0x1c0] sm:$0xff] }
  0xc3   : > { %v935_v33 = vadd.f32 %v934_v11, %v933_v58  ;;  %v943_v53 = vrot.slane %v905_v2, 7  ;;  %v970_v48 = vmul.f32 %v963_v0, %v2293_v14  ;;  %v944_v41 = vrot.slane %v911_v26, 6 }
  0xc4   : > { %v945_v34 = vrot.slane %v917_v28, 5  ;;  %v946_v27 = vrot.slane %v923_v29, 4  ;;  %v978_v5 = vmul.f32 %v971_v16, %v2295_v15  ;;  %v947_v47 = vrot.slane %v929_v39, 3  ;;  %v1056_v16 = vld [vmem:[%s2270_s26 + $0x1c8] sm:$0xff] }
  0xc5   : > { %v948_v22 = vrot.slane %v935_v33, 2  ;;  %v949_v23 = vsel %vm351_vm0, %v899_v46, %v943_v53  ;;  %v979_v50 = vmul.f32 %v972_v32, %v2298_v17  ;;  %v980_v56 = vmul.f32 %v973_v37, %v2300_v18 }
  0xc6   : > { %v950_v51 = vsel %vm353_vm1, %v944_v41, %v945_v34  ;;  %v981_v21 = vmul.f32 %v974_v10, %v2302_v19  ;;  %v982_v52 = vmul.f32 %v975_v44, %v2304_v20  ;;  %v952_v30 = vsel %vm357_vm2, %v946_v27, %v947_v47  ;;  %v1058_v41 = vld [vmem:[%s2270_s26 + $0x1d8] sm:$0xff] }
  0xc7   : > { %v951_v60 = vsel %vm355_vm3, %v949_v23, %v950_v51  ;;  %v983_v42 = vmul.f32 %v976_v43, %v2309_v24  ;;  %v984_v54 = vmul.f32 %v977_v62, %v2311_v25  ;;  %v953_v59 = vsel %vm359_vm4, %v952_v30, %v948_v22 }
  0xc8   : > { %v985_v49 = vadd.f32 %v978_v5, %v2610_v40  ;;  %v986_v35 = vadd.f32 %v979_v50, %v2614_v38  ;;  %v987_v58 = vadd.f32 %v980_v56, %v966_v63  ;;  %v954_v36 = vsel %vm361_vm5, %v951_v60, %v953_v59  ;;  %v1059_v50 = vld [vmem:[%s2270_s26 + $0x1e0] sm:$0xff]  ;;  %v1060_v59 = vld [vmem:[%s2270_s26 + $0x1e8] sm:$0xff] }
  0xc9   : > { %v988_v57 = vadd.f32 %v981_v21, %v967_v55  ;;  %v989_v61 = vadd.f32 %v982_v52, %v968_v1  ;;  %v990_v0 = vadd.f32 %v983_v42, %v969_v31  ;;  %956 = vst.msk [vmem:[%s2388_s6 + $0x2a] sm:$0x7f] %vm2353_vm6, %v954_v36  ;;  %v991_v46 = vadd.f32 %v984_v54, %v970_v48  ;;  %v1057_v31 = vld [vmem:[%s2270_s26 + $0x1d0] sm:$0xff] }
  0xca   : > { %v992_v2 = vrot.slane %v985_v49, 4  ;;  %v998_v3 = vrot.slane %v986_v35, 4  ;;  %v1004_v11 = vrot.slane %v987_v58, 4  ;;  %v2653_v63 = vmul.f32 %v1055_v4, %v2281_v6  ;;  %v1061_v4 = vld [vmem:[%s2270_s26 + $0x1f0] sm:$0xff] }
  0xcb   : > { %v1010_v26 = vrot.slane %v988_v57, 4  ;;  %v1016_v40 = vrot.slane %v989_v61, 4  ;;  %v1022_v38 = vrot.slane %v990_v0, 4  ;;  %v1028_v29 = vrot.slane %v991_v46, 4 }
  0xcc   : > { %v993_v28 = vadd.f32 %v992_v2, %v985_v49  ;;  %v999_v55 = vadd.f32 %v998_v3, %v986_v35  ;;  %v1005_v1 = vadd.f32 %v1004_v11, %v987_v58  ;;  %v2657_v53 = vmul.f32 %v1056_v16, %v2283_v7  ;;  %v1069_v2 = vld [vmem:[%s2270_s26 + $0x4d0] sm:$0xff] }
  0xcd   : > { %v1011_v32 = vadd.f32 %v1010_v26, %v988_v57  ;;  %v1017_v39 = vadd.f32 %v1016_v40, %v989_v61  ;;  %v1023_v33 = vadd.f32 %v1022_v38, %v990_v0  ;;  %v1029_v44 = vadd.f32 %v1028_v29, %v991_v46  ;;  %v1070_v40 = vld [vmem:[%s2270_s26 + $0x4d8] sm:$0xff]  ;;  %v1071_v38 = vld [vmem:[%s2270_s26 + $0x4e0] sm:$0xff] }
  0xce   : > { %v994_v48 = vrot.slane %v993_v28, 2  ;;  %v1000_v37 = vrot.slane %v999_v55, 2  ;;  %v1006_v10 = vrot.slane %v1005_v1, 2  ;;  %v1064_v62 = vmul.f32 %v1057_v31, %v2285_v8  ;;  %v1072_v31 = vld [vmem:[%s2270_s26 + $0x4e8] sm:$0xff] }
  0xcf   : > { %v1012_v34 = vrot.slane %v1011_v32, 2  ;;  %v1018_v27 = vrot.slane %v1017_v39, 2  ;;  %v1024_v43 = vrot.slane %v1023_v33, 2  ;;  %v1030_v23 = vrot.slane %v1029_v44, 2 }
  0xd0   : > { %v995_v5 = vadd.f32 %v994_v48, %v993_v28  ;;  %v1001_v47 = vadd.f32 %v1000_v37, %v999_v55  ;;  %v1007_v22 = vadd.f32 %v1006_v10, %v1005_v1  ;;  %v1065_v52 = vmul.f32 %v1058_v41, %v2287_v9  ;;  %v1074_v37 = vld [vmem:[%s2270_s26 + $0x4f8] sm:$0xff]  ;;  %v1075_v10 = vld [vmem:[%s2270_s26 + $0x500] sm:$0xff] }
  0xd1   : > { %v1013_v51 = vadd.f32 %v1012_v34, %v1011_v32  ;;  %v1019_v56 = vadd.f32 %v1018_v27, %v1017_v39  ;;  %v1025_v21 = vadd.f32 %v1024_v43, %v1023_v33  ;;  %v1031_v54 = vadd.f32 %v1030_v23, %v1029_v44  ;;  %v1073_v32 = vld [vmem:[%s2270_s26 + $0x4f0] sm:$0xff] }
  0xd2   : > { %v996_v60 = vrot.slane %v995_v5, 1  ;;  %v1002_v30 = vrot.slane %v1001_v47, 1  ;;  %v1008_v42 = vrot.slane %v1007_v22, 1  ;;  %v1066_v36 = vmul.f32 %v1059_v50, %v2289_v12 }
  0xd3   : > { %v1014_v49 = vrot.slane %v1013_v51, 1  ;;  %v1020_v35 = vrot.slane %v1019_v56, 1  ;;  %v1026_v58 = vrot.slane %v1025_v21, 1  ;;  %v1032_v46 = vrot.slane %v1031_v54, 1 }
  0xd4   : > { %v997_v57 = vadd.f32 %v996_v60, %v995_v5  ;;  %v1003_v61 = vadd.f32 %v1002_v30, %v1001_v47  ;;  %v1009_v0 = vadd.f32 %v1008_v42, %v1007_v22  ;;  %v1067_v26 = vmul.f32 %v1060_v59, %v2291_v13  ;;  %v1153_v60 = vld [vmem:[%s2270_s26 + $0x1f8] sm:$0xff] }
  0xd5   : > { %v1015_v3 = vadd.f32 %v1014_v49, %v1013_v51  ;;  %v1021_v11 = vadd.f32 %v1020_v35, %v1019_v56  ;;  %v1027_v16 = vadd.f32 %v1026_v58, %v1025_v21  ;;  %v1033_v28 = vadd.f32 %v1032_v46, %v1031_v54 }
  0xd6   : > { %v1041_v55 = vrot.slane %v1003_v61, 7  ;;  %v1042_v1 = vrot.slane %v1009_v0, 6  ;;  %v1068_v29 = vmul.f32 %v1061_v4, %v2293_v14  ;;  %v1076_v44 = vmul.f32 %v1069_v2, %v2295_v15 }
  0xd7   : > { %v1043_v39 = vrot.slane %v1015_v3, 5  ;;  %v1044_v33 = vrot.slane %v1021_v11, 4  ;;  %v1045_v48 = vrot.slane %v1027_v16, 3  ;;  %v1046_v41 = vrot.slane %v1033_v28, 2 }
  0xd8   : > { %v1047_v34 = vsel %vm351_vm0, %v997_v57, %v1041_v55  ;;  %v1077_v27 = vmul.f32 %v1070_v40, %v2298_v17  ;;  %v1078_v43 = vmul.f32 %v1071_v38, %v2300_v18  ;;  %v1079_v22 = vmul.f32 %v1072_v31, %v2302_v19  ;;  %v1154_v57 = vld [vmem:[%s2270_s26 + $0x200] sm:$0xff] }
  0xd9   : > { %v1048_v5 = vsel %vm353_vm1, %v1042_v1, %v1043_v39  ;;  %v1050_v47 = vsel %vm357_vm2, %v1044_v33, %v1045_v48  ;;  %v1080_v23 = vmul.f32 %v1073_v32, %v2304_v20  ;;  %v1081_v56 = vmul.f32 %v1074_v37, %v2309_v24  ;;  %v1156_v1 = vld [vmem:[%s2270_s26 + $0x210] sm:$0xff] }
  0xda   : > { %v1049_v50 = vsel %vm355_vm3, %v1047_v34, %v1048_v5  ;;  %v1051_v51 = vsel %vm359_vm4, %v1050_v47, %v1046_v41  ;;  %v1082_v21 = vmul.f32 %v1075_v10, %v2311_v25  ;;  %v1083_v42 = vadd.f32 %v1076_v44, %v2653_v63  ;;  %v1157_v44 = vld [vmem:[%s2270_s26 + $0x218] sm:$0xff] }
  0xdb   : > { %v1052_v30 = vsel %vm361_vm5, %v1049_v50, %v1051_v51  ;;  %v1084_v54 = vadd.f32 %v1077_v27, %v2657_v53  ;;  %v1085_v59 = vadd.f32 %v1078_v43, %v1064_v62  ;;  %v1086_v49 = vadd.f32 %v1079_v22, %v1065_v52  ;;  %v1155_v62 = vld [vmem:[%s2270_s26 + $0x208] sm:$0xff]  ;;  %v1158_v50 = vld [vmem:[%s2270_s26 + $0x220] sm:$0xff] }
  0xdc   : > { %1054 = vst.msk [vmem:[%s2388_s6 + $0x31] sm:$0x7f] %vm2353_vm6, %v1052_v30  ;;  %v1087_v35 = vadd.f32 %v1080_v23, %v1066_v36  ;;  %v1088_v58 = vadd.f32 %v1081_v56, %v1067_v26  ;;  %v1089_v4 = vadd.f32 %v1082_v21, %v1068_v29  ;;  %v1090_v61 = vrot.slane %v1083_v42, 4 }
  0xdd   : > { %v1096_v0 = vrot.slane %v1084_v54, 4  ;;  %v1102_v46 = vrot.slane %v1085_v59, 4  ;;  %v2696_v2 = vmul.f32 %v1153_v60, %v2281_v6  ;;  %v1108_v63 = vrot.slane %v1086_v49, 4 }
  0xde   : > { %v1114_v3 = vrot.slane %v1087_v35, 4  ;;  %v1120_v53 = vrot.slane %v1088_v58, 4  ;;  %v1126_v11 = vrot.slane %v1089_v4, 4  ;;  %v1091_v16 = vadd.f32 %v1090_v61, %v1083_v42 }
  0xdf   : > { %v1097_v40 = vadd.f32 %v1096_v0, %v1084_v54  ;;  %v1103_v52 = vadd.f32 %v1102_v46, %v1085_v59  ;;  %v2700_v36 = vmul.f32 %v1154_v57, %v2283_v7  ;;  %v1109_v26 = vadd.f32 %v1108_v63, %v1086_v49  ;;  %v1159_v49 = vld [vmem:[%s2270_s26 + $0x228] sm:$0xff] }
  0xe0   : > { %v1115_v38 = vadd.f32 %v1114_v3, %v1087_v35  ;;  %v1121_v28 = vadd.f32 %v1120_v53, %v1088_v58  ;;  %v1127_v55 = vadd.f32 %v1126_v11, %v1089_v4  ;;  %v1092_v29 = vrot.slane %v1091_v16, 2  ;;  %v1167_v35 = vld [vmem:[%s2270_s26 + $0x508] sm:$0xff]  ;;  %v1168_v53 = vld [vmem:[%s2270_s26 + $0x510] sm:$0xff]  ;;  %v1169_v11 = vld [vmem:[%s2270_s26 + $0x518] sm:$0xff] }
  0xe1   : > { %v1098_v31 = vrot.slane %v1097_v40, 2  ;;  %v1104_v32 = vrot.slane %v1103_v52, 2  ;;  %v1162_v39 = vmul.f32 %v1155_v62, %v2285_v8  ;;  %v1110_v33 = vrot.slane %v1109_v26, 2  ;;  %v1170_v62 = vld [vmem:[%s2270_s26 + $0x520] sm:$0xff] }
  0xe2   : > { %v1116_v48 = vrot.slane %v1115_v38, 2  ;;  %v1122_v37 = vrot.slane %v1121_v28, 2  ;;  %v1128_v10 = vrot.slane %v1127_v55, 2  ;;  %v1093_v41 = vadd.f32 %v1092_v29, %v1091_v16 }
  0xe3   : > { %v1099_v34 = vadd.f32 %v1098_v31, %v1097_v40  ;;  %v1105_v27 = vadd.f32 %v1104_v32, %v1103_v52  ;;  %v1163_v43 = vmul.f32 %v1156_v1, %v2287_v9  ;;  %v1111_v5 = vadd.f32 %v1110_v33, %v1109_v26  ;;  %v1171_v26 = vld [vmem:[%s2270_s26 + $0x528] sm:$0xff]  ;;  %v1173_v32 = vld [vmem:[%s2270_s26 + $0x538] sm:$0xff] }
  0xe4   : > { %v1117_v47 = vadd.f32 %v1116_v48, %v1115_v38  ;;  %v1123_v22 = vadd.f32 %v1122_v37, %v1121_v28  ;;  %v1129_v23 = vadd.f32 %v1128_v10, %v1127_v55  ;;  %v1094_v51 = vrot.slane %v1093_v41, 1  ;;  %v1172_v38 = vld [vmem:[%s2270_s26 + $0x530] sm:$0xff] }
  0xe5   : > { %v1100_v56 = vrot.slane %v1099_v34, 1  ;;  %v1106_v21 = vrot.slane %v1105_v27, 1  ;;  %v1164_v60 = vmul.f32 %v1157_v44, %v2289_v12  ;;  %v1112_v30 = vrot.slane %v1111_v5, 1 }
  0xe6   : > { %v1118_v42 = vrot.slane %v1117_v47, 1  ;;  %v1124_v54 = vrot.slane %v1123_v22, 1  ;;  %v1130_v59 = vrot.slane %v1129_v23, 1  ;;  %v1095_v58 = vadd.f32 %v1094_v51, %v1093_v41 }
  0xe7   : > { %v1101_v4 = vadd.f32 %v1100_v56, %v1099_v34  ;;  %v1107_v57 = vadd.f32 %v1106_v21, %v1105_v27  ;;  %v1165_v61 = vmul.f32 %v1158_v50, %v2291_v13  ;;  %v1113_v0 = vadd.f32 %v1112_v30, %v1111_v5  ;;  %v1251_v50 = vld [vmem:[%s2270_s26 + $0x230] sm:$0xff] }
  0xe8   : > { %v1119_v46 = vadd.f32 %v1118_v42, %v1117_v47  ;;  %v1125_v63 = vadd.f32 %v1124_v54, %v1123_v22  ;;  %v1131_v3 = vadd.f32 %v1130_v59, %v1129_v23  ;;  %v1166_v52 = vmul.f32 %v1159_v49, %v2293_v14 }
  0xe9   : > { %v1139_v16 = vrot.slane %v1101_v4, 7  ;;  %v1140_v40 = vrot.slane %v1107_v57, 6  ;;  %v1174_v28 = vmul.f32 %v1167_v35, %v2295_v15  ;;  %v1141_v55 = vrot.slane %v1113_v0, 5  ;;  %v1252_v35 = vld [vmem:[%s2270_s26 + $0x238] sm:$0xff] }
  0xea   : > { %v1142_v1 = vrot.slane %v1119_v46, 4  ;;  %v1143_v29 = vrot.slane %v1125_v63, 3  ;;  %v1144_v31 = vrot.slane %v1131_v3, 2  ;;  %v1175_v48 = vmul.f32 %v1168_v53, %v2298_v17 }
  0xeb   : > { %v1145_v33 = vsel %vm351_vm0, %v1095_v58, %v1139_v16  ;;  %v1176_v37 = vmul.f32 %v1169_v11, %v2300_v18  ;;  %v1177_v10 = vmul.f32 %v1170_v62, %v2302_v19  ;;  %v1146_v44 = vsel %vm353_vm1, %v1140_v40, %v1141_v55  ;;  %v1254_v40 = vld [vmem:[%s2270_s26 + $0x248] sm:$0xff] }
  0xec   : > { %v1148_v41 = vsel %vm357_vm2, %v1142_v1, %v1143_v29  ;;  %v1178_v34 = vmul.f32 %v1171_v26, %v2304_v20  ;;  %v1179_v27 = vmul.f32 %v1172_v38, %v2309_v24  ;;  %v1147_v5 = vsel %vm355_vm3, %v1145_v33, %v1146_v44 }
  0xed   : > { %v1149_v47 = vsel %vm359_vm4, %v1148_v41, %v1144_v31  ;;  %v1180_v22 = vmul.f32 %v1173_v32, %v2311_v25  ;;  %v1181_v23 = vadd.f32 %v1174_v28, %v2696_v2  ;;  %v1182_v56 = vadd.f32 %v1175_v48, %v2700_v36  ;;  %v1255_v32 = vld [vmem:[%s2270_s26 + $0x250] sm:$0xff] }
  0xee   : > { %v1150_v51 = vsel %vm361_vm5, %v1147_v5, %v1149_v47  ;;  %v1183_v21 = vadd.f32 %v1176_v37, %v1162_v39  ;;  %v1184_v30 = vadd.f32 %v1177_v10, %v1163_v43  ;;  %v1185_v42 = vadd.f32 %v1178_v34, %v1164_v60  ;;  %v1253_v43 = vld [vmem:[%s2270_s26 + $0x240] sm:$0xff]  ;;  %v1256_v5 = vld [vmem:[%s2270_s26 + $0x258] sm:$0xff] }
  0xef   : > { %1152 = vst.msk [vmem:[%s2388_s6 + $0x38] sm:$0x7f] %vm2353_vm6, %v1150_v51  ;;  %v1186_v54 = vadd.f32 %v1179_v27, %v1165_v61  ;;  %v1187_v59 = vadd.f32 %v1180_v22, %v1166_v52  ;;  %v1188_v49 = vrot.slane %v1181_v23, 4  ;;  %v1194_v58 = vrot.slane %v1182_v56, 4 }
  0xf0   : > { %v1200_v4 = vrot.slane %v1183_v21, 4  ;;  %v1206_v2 = vrot.slane %v1184_v30, 4  ;;  %v2739_v57 = vmul.f32 %v1251_v50, %v2281_v6  ;;  %v1212_v36 = vrot.slane %v1185_v42, 4  ;;  %v1257_v50 = vld [vmem:[%s2270_s26 + $0x260] sm:$0xff] }
  0xf1   : > { %v1189_v0 = vadd.f32 %v1188_v49, %v1181_v23  ;;  %v1218_v39 = vrot.slane %v1186_v54, 4  ;;  %v1224_v46 = vrot.slane %v1187_v59, 4  ;;  %v1195_v63 = vadd.f32 %v1194_v58, %v1182_v56 }
  0xf2   : > { %v1201_v3 = vadd.f32 %v1200_v4, %v1183_v21  ;;  %v1207_v60 = vadd.f32 %v1206_v2, %v1184_v30  ;;  %v2743_v61 = vmul.f32 %v1252_v35, %v2283_v7  ;;  %v1213_v11 = vadd.f32 %v1212_v36, %v1185_v42  ;;  %v1266_v4 = vld [vmem:[%s2270_s26 + $0x548] sm:$0xff] }
  0xf3   : > { %v1190_v53 = vrot.slane %v1189_v0, 2  ;;  %v1219_v62 = vadd.f32 %v1218_v39, %v1186_v54  ;;  %v1225_v16 = vadd.f32 %v1224_v46, %v1187_v59  ;;  %v1196_v52 = vrot.slane %v1195_v63, 2  ;;  %v1265_v54 = vld [vmem:[%s2270_s26 + $0x540] sm:$0xff]  ;;  %v1267_v46 = vld [vmem:[%s2270_s26 + $0x550] sm:$0xff] }
  0xf4   : > { %v1202_v26 = vrot.slane %v1201_v3, 2  ;;  %v1208_v38 = vrot.slane %v1207_v60, 2  ;;  %v1260_v28 = vmul.f32 %v1253_v43, %v2285_v8  ;;  %v1214_v1 = vrot.slane %v1213_v11, 2  ;;  %v1268_v43 = vld [vmem:[%s2270_s26 + $0x558] sm:$0xff] }
  0xf5   : > { %v1191_v55 = vadd.f32 %v1190_v53, %v1189_v0  ;;  %v1220_v29 = vrot.slane %v1219_v62, 2  ;;  %v1226_v31 = vrot.slane %v1225_v16, 2  ;;  %v1197_v33 = vadd.f32 %v1196_v52, %v1195_v63  ;;  %v1269_v53 = vld [vmem:[%s2270_s26 + $0x560] sm:$0xff] }
  0xf6   : > { %v1203_v48 = vadd.f32 %v1202_v26, %v1201_v3  ;;  %v1209_v37 = vadd.f32 %v1208_v38, %v1207_v60  ;;  %v1261_v10 = vmul.f32 %v1254_v40, %v2287_v9  ;;  %v1215_v41 = vadd.f32 %v1214_v1, %v1213_v11  ;;  %v1270_v11 = vld [vmem:[%s2270_s26 + $0x568] sm:$0xff]  ;;  %v1271_v26 = vld [vmem:[%s2270_s26 + $0x570] sm:$0xff] }
  0xf7   : > { %v1192_v44 = vrot.slane %v1191_v55, 1  ;;  %v1221_v34 = vadd.f32 %v1220_v29, %v1219_v62  ;;  %v1227_v27 = vadd.f32 %v1226_v31, %v1225_v16  ;;  %v1198_v47 = vrot.slane %v1197_v33, 1 }
  0xf8   : > { %v1204_v22 = vrot.slane %v1203_v48, 1  ;;  %v1210_v23 = vrot.slane %v1209_v37, 1  ;;  %v1262_v51 = vmul.f32 %v1255_v32, %v2289_v12  ;;  %v1216_v21 = vrot.slane %v1215_v41, 1 }
  0xf9   : > { %v1193_v56 = vadd.f32 %v1192_v44, %v1191_v55  ;;  %v1222_v30 = vrot.slane %v1221_v34, 1  ;;  %v1228_v42 = vrot.slane %v1227_v27, 1  ;;  %v1199_v59 = vadd.f32 %v1198_v47, %v1197_v33 }
  0xfa   : > { %v1205_v49 = vadd.f32 %v1204_v22, %v1203_v48  ;;  %v1211_v35 = vadd.f32 %v1210_v23, %v1209_v37  ;;  %v1263_v58 = vmul.f32 %v1256_v5, %v2291_v13  ;;  %v1217_v2 = vadd.f32 %v1216_v21, %v1215_v41  ;;  %v1349_v5 = vld [vmem:[%s2270_s26 + $0x268] sm:$0xff] }
  0xfb   : > { %v1223_v0 = vadd.f32 %v1222_v30, %v1221_v34  ;;  %v1229_v36 = vadd.f32 %v1228_v42, %v1227_v27  ;;  %v1264_v39 = vmul.f32 %v1257_v50, %v2293_v14  ;;  %v1237_v63 = vrot.slane %v1199_v59, 7 }
  0xfc   : > { %v1238_v3 = vrot.slane %v1205_v49, 6  ;;  %v1239_v60 = vrot.slane %v1211_v35, 5  ;;  %v1272_v62 = vmul.f32 %v1265_v54, %v2295_v15  ;;  %v1240_v16 = vrot.slane %v1217_v2, 4  ;;  %v1350_v54 = vld [vmem:[%s2270_s26 + $0x270] sm:$0xff] }
  0xfd   : > { %v1241_v40 = vrot.slane %v1223_v0, 3  ;;  %v1242_v52 = vrot.slane %v1229_v36, 2  ;;  %v1273_v38 = vmul.f32 %v1266_v4, %v2298_v17  ;;  %v1243_v55 = vsel %vm351_vm0, %v1193_v56, %v1237_v63 }
  0xfe   : > { %v1244_v1 = vsel %vm353_vm1, %v1238_v3, %v1239_v60  ;;  %v1274_v29 = vmul.f32 %v1267_v46, %v2300_v18  ;;  %v1275_v31 = vmul.f32 %v1268_v43, %v2302_v19  ;;  %v1276_v48 = vmul.f32 %v1269_v53, %v2304_v20  ;;  %v1352_v3 = vld [vmem:[%s2270_s26 + $0x280] sm:$0xff] }
  0xff   : > { %v1245_v32 = vsel %vm355_vm3, %v1243_v55, %v1244_v1  ;;  %v1246_v33 = vsel %vm357_vm2, %v1240_v16, %v1241_v40  ;;  %v1277_v37 = vmul.f32 %v1270_v11, %v2309_v24  ;;  %v1278_v41 = vmul.f32 %v1271_v26, %v2311_v25 }
 0x100   : > { %v1247_v44 = vsel %vm359_vm4, %v1246_v33, %v1242_v52  ;;  %v1279_v34 = vadd.f32 %v1272_v62, %v2739_v57  ;;  %v1280_v27 = vadd.f32 %v1273_v38, %v2743_v61  ;;  %v1281_v22 = vadd.f32 %v1274_v29, %v1260_v28  ;;  %v1353_v38 = vld [vmem:[%s2270_s26 + $0x288] sm:$0xff] }
 0x101   : > { %v1248_v47 = vsel %vm361_vm5, %v1245_v32, %v1247_v44  ;;  %v1282_v23 = vadd.f32 %v1275_v31, %v1261_v10  ;;  %v1283_v50 = vadd.f32 %v1276_v48, %v1262_v51  ;;  %v1284_v56 = vadd.f32 %v1277_v37, %v1263_v58  ;;  %v1351_v51 = vld [vmem:[%s2270_s26 + $0x278] sm:$0xff]  ;;  %v1354_v44 = vld [vmem:[%s2270_s26 + $0x290] sm:$0xff] }
 0x102   : > { %1250 = vst.msk [vmem:[%s2388_s6 + $0x3f] sm:$0x7f] %vm2353_vm6, %v1248_v47  ;;  %v1285_v21 = vadd.f32 %v1278_v41, %v1264_v39  ;;  %v1286_v30 = vrot.slane %v1279_v34, 4  ;;  %v1292_v42 = vrot.slane %v1280_v27, 4  ;;  %v1298_v59 = vrot.slane %v1281_v22, 4 }
 0x103   : > { %v1304_v49 = vrot.slane %v1282_v23, 4  ;;  %v1310_v57 = vrot.slane %v1283_v50, 4  ;;  %v2782_v61 = vmul.f32 %v1349_v5, %v2281_v6  ;;  %v1316_v10 = vrot.slane %v1284_v56, 4  ;;  %v1355_v5 = vld [vmem:[%s2270_s26 + $0x298] sm:$0xff] }
 0x104   : > { %v1287_v35 = vadd.f32 %v1286_v30, %v1279_v34  ;;  %v1293_v28 = vadd.f32 %v1292_v42, %v1280_v27  ;;  %v1322_v4 = vrot.slane %v1285_v21, 4  ;;  %v1299_v2 = vadd.f32 %v1298_v59, %v1281_v22 }
 0x105   : > { %v1305_v0 = vadd.f32 %v1304_v49, %v1282_v23  ;;  %v1311_v58 = vadd.f32 %v1310_v57, %v1283_v50  ;;  %v2786_v36 = vmul.f32 %v1350_v54, %v2283_v7  ;;  %v1317_v43 = vadd.f32 %v1316_v10, %v1284_v56  ;;  %v1364_v49 = vld [vmem:[%s2270_s26 + $0x580] sm:$0xff] }
 0x106   : > { %v1288_v39 = vrot.slane %v1287_v35, 2  ;;  %v1294_v46 = vrot.slane %v1293_v28, 2  ;;  %v1323_v63 = vadd.f32 %v1322_v4, %v1285_v21  ;;  %v1300_v60 = vrot.slane %v1299_v2, 2  ;;  %v1363_v21 = vld [vmem:[%s2270_s26 + $0x578] sm:$0xff]  ;;  %v1365_v4 = vld [vmem:[%s2270_s26 + $0x588] sm:$0xff] }
 0x107   : > { %v1306_v53 = vrot.slane %v1305_v0, 2  ;;  %v1312_v11 = vrot.slane %v1311_v58, 2  ;;  %v1358_v62 = vmul.f32 %v1351_v51, %v2285_v8  ;;  %v1318_v52 = vrot.slane %v1317_v43, 2  ;;  %v1366_v51 = vld [vmem:[%s2270_s26 + $0x590] sm:$0xff] }
 0x108   : > { %v1289_v16 = vadd.f32 %v1288_v39, %v1287_v35  ;;  %v1295_v40 = vadd.f32 %v1294_v46, %v1293_v28  ;;  %v1324_v26 = vrot.slane %v1323_v63, 2  ;;  %v1301_v55 = vadd.f32 %v1300_v60, %v1299_v2  ;;  %v1367_v2 = vld [vmem:[%s2270_s26 + $0x598] sm:$0xff]  ;;  %v1368_v46 = vld [vmem:[%s2270_s26 + $0x5a0] sm:$0xff] }
 0x109   : > { %v1307_v1 = vadd.f32 %v1306_v53, %v1305_v0  ;;  %v1313_v29 = vadd.f32 %v1312_v11, %v1311_v58  ;;  %v1359_v31 = vmul.f32 %v1352_v3, %v2287_v9  ;;  %v1319_v48 = vadd.f32 %v1318_v52, %v1317_v43  ;;  %v1369_v43 = vld [vmem:[%s2270_s26 + $0x5a8] sm:$0xff] }
 0x10a   : > { %v1290_v32 = vrot.slane %v1289_v16, 1  ;;  %v1296_v33 = vrot.slane %v1295_v40, 1  ;;  %v1325_v37 = vadd.f32 %v1324_v26, %v1323_v63  ;;  %v1302_v41 = vrot.slane %v1301_v55, 1 }
 0x10b   : > { %v1308_v34 = vrot.slane %v1307_v1, 1  ;;  %v1314_v27 = vrot.slane %v1313_v29, 1  ;;  %v1360_v47 = vmul.f32 %v1353_v38, %v2289_v12  ;;  %v1320_v50 = vrot.slane %v1319_v48, 1 }
 0x10c   : > { %v1291_v22 = vadd.f32 %v1290_v32, %v1289_v16  ;;  %v1297_v23 = vadd.f32 %v1296_v33, %v1295_v40  ;;  %v1326_v56 = vrot.slane %v1325_v37, 1  ;;  %v1303_v30 = vadd.f32 %v1302_v41, %v1301_v55 }
 0x10d   : > { %v1309_v42 = vadd.f32 %v1308_v34, %v1307_v1  ;;  %v1315_v54 = vadd.f32 %v1314_v27, %v1313_v29  ;;  %v1361_v59 = vmul.f32 %v1354_v44, %v2291_v13  ;;  %v1321_v57 = vadd.f32 %v1320_v50, %v1319_v48  ;;  %v1447_v44 = vld [vmem:[%s2270_s26 + $0x2a0] sm:$0xff] }
 0x10e   : > { %v1327_v35 = vadd.f32 %v1326_v56, %v1325_v37  ;;  %v1335_v28 = vrot.slane %v1297_v23, 7  ;;  %v1362_v10 = vmul.f32 %v1355_v5, %v2293_v14  ;;  %v1336_v0 = vrot.slane %v1303_v30, 6 }
 0x10f   : > { %v1337_v58 = vrot.slane %v1309_v42, 5  ;;  %v1338_v39 = vrot.slane %v1315_v54, 4  ;;  %v1370_v63 = vmul.f32 %v1363_v21, %v2295_v15  ;;  %v1339_v3 = vrot.slane %v1321_v57, 3  ;;  %v1448_v21 = vld [vmem:[%s2270_s26 + $0x2a8] sm:$0xff] }
 0x110   : > { %v1340_v60 = vrot.slane %v1327_v35, 2  ;;  %v1341_v53 = vsel %vm351_vm0, %v1291_v22, %v1335_v28  ;;  %v1371_v11 = vmul.f32 %v1364_v49, %v2298_v17  ;;  %v1372_v40 = vmul.f32 %v1365_v4, %v2300_v18 }
 0x111   : > { %v1342_v16 = vsel %vm353_vm1, %v1336_v0, %v1337_v58  ;;  %v1373_v52 = vmul.f32 %v1366_v51, %v2302_v19  ;;  %v1374_v26 = vmul.f32 %v1367_v2, %v2304_v20  ;;  %v1344_v55 = vsel %vm357_vm2, %v1338_v39, %v1339_v3  ;;  %v1450_v0 = vld [vmem:[%s2270_s26 + $0x2b8] sm:$0xff] }
 0x112   : > { %v1343_v38 = vsel %vm355_vm3, %v1341_v53, %v1342_v16  ;;  %v1375_v1 = vmul.f32 %v1368_v46, %v2309_v24  ;;  %v1376_v29 = vmul.f32 %v1369_v43, %v2311_v25  ;;  %v1345_v32 = vsel %vm359_vm4, %v1344_v55, %v1340_v60 }
 0x113   : > { %v1377_v33 = vadd.f32 %v1370_v63, %v2782_v61  ;;  %v1378_v48 = vadd.f32 %v1371_v11, %v2786_v36  ;;  %v1379_v37 = vadd.f32 %v1372_v40, %v1358_v62  ;;  %v1346_v41 = vsel %vm361_vm5, %v1343_v38, %v1345_v32  ;;  %v1451_v11 = vld [vmem:[%s2270_s26 + $0x2c0] sm:$0xff]  ;;  %v1452_v32 = vld [vmem:[%s2270_s26 + $0x2c8] sm:$0xff] }
 0x114   : > { %v1380_v34 = vadd.f32 %v1373_v52, %v1359_v31  ;;  %v1381_v27 = vadd.f32 %v1374_v26, %v1360_v47  ;;  %v1382_v5 = vadd.f32 %v1375_v1, %v1361_v59  ;;  %1348 = vst.msk [vmem:[%s2388_s6 + $0x46] sm:$0x7f] %vm2353_vm6, %v1346_v41  ;;  %v1383_v22 = vadd.f32 %v1376_v29, %v1362_v10  ;;  %v1449_v59 = vld [vmem:[%s2270_s26 + $0x2b0] sm:$0xff] }
 0x115   : > { %v1384_v23 = vrot.slane %v1377_v33, 4  ;;  %v1390_v50 = vrot.slane %v1378_v48, 4  ;;  %v1396_v56 = vrot.slane %v1379_v37, 4  ;;  %v2825_v62 = vmul.f32 %v1447_v44, %v2281_v6  ;;  %v1453_v44 = vld [vmem:[%s2270_s26 + $0x2d0] sm:$0xff] }
 0x116   : > { %v1402_v30 = vrot.slane %v1380_v34, 4  ;;  %v1408_v61 = vrot.slane %v1381_v27, 4  ;;  %v1414_v36 = vrot.slane %v1382_v5, 4  ;;  %v1420_v54 = vrot.slane %v1383_v22, 4 }
 0x117   : > { %v1385_v42 = vadd.f32 %v1384_v23, %v1377_v33  ;;  %v1391_v31 = vadd.f32 %v1390_v50, %v1378_v48  ;;  %v1397_v47 = vadd.f32 %v1396_v56, %v1379_v37  ;;  %v2829_v28 = vmul.f32 %v1448_v21, %v2283_v7  ;;  %v1461_v23 = vld [vmem:[%s2270_s26 + $0x5b0] sm:$0xff] }
 0x118   : > { %v1403_v49 = vadd.f32 %v1402_v30, %v1380_v34  ;;  %v1409_v57 = vadd.f32 %v1408_v61, %v1381_v27  ;;  %v1415_v35 = vadd.f32 %v1414_v36, %v1382_v5  ;;  %v1421_v2 = vadd.f32 %v1420_v54, %v1383_v22  ;;  %v1462_v61 = vld [vmem:[%s2270_s26 + $0x5b8] sm:$0xff]  ;;  %v1463_v36 = vld [vmem:[%s2270_s26 + $0x5c0] sm:$0xff] }
 0x119   : > { %v1386_v10 = vrot.slane %v1385_v42, 2  ;;  %v1392_v4 = vrot.slane %v1391_v31, 2  ;;  %v1398_v51 = vrot.slane %v1397_v47, 2  ;;  %v1456_v43 = vmul.f32 %v1449_v59, %v2285_v8  ;;  %v1464_v59 = vld [vmem:[%s2270_s26 + $0x5c8] sm:$0xff] }
 0x11a   : > { %v1404_v58 = vrot.slane %v1403_v49, 2  ;;  %v1410_v39 = vrot.slane %v1409_v57, 2  ;;  %v1416_v46 = vrot.slane %v1415_v35, 2  ;;  %v1422_v53 = vrot.slane %v1421_v2, 2 }
 0x11b   : > { %v1387_v63 = vadd.f32 %v1386_v10, %v1385_v42  ;;  %v1393_v3 = vadd.f32 %v1392_v4, %v1391_v31  ;;  %v1399_v60 = vadd.f32 %v1398_v51, %v1397_v47  ;;  %v1457_v26 = vmul.f32 %v1450_v0, %v2287_v9  ;;  %v1466_v4 = vld [vmem:[%s2270_s26 + $0x5d8] sm:$0xff]  ;;  %v1467_v51 = vld [vmem:[%s2270_s26 + $0x5e0] sm:$0xff] }
 0x11c   : > { %v1405_v16 = vadd.f32 %v1404_v58, %v1403_v49  ;;  %v1411_v40 = vadd.f32 %v1410_v39, %v1409_v57  ;;  %v1417_v52 = vadd.f32 %v1416_v46, %v1415_v35  ;;  %v1423_v29 = vadd.f32 %v1422_v53, %v1421_v2  ;;  %v1465_v49 = vld [vmem:[%s2270_s26 + $0x5d0] sm:$0xff] }
 0x11d   : > { %v1388_v38 = vrot.slane %v1387_v63, 1  ;;  %v1394_v55 = vrot.slane %v1393_v3, 1  ;;  %v1400_v1 = vrot.slane %v1399_v60, 1  ;;  %v1458_v41 = vmul.f32 %v1451_v11, %v2289_v12 }
 0x11e   : > { %v1406_v33 = vrot.slane %v1405_v16, 1  ;;  %v1412_v48 = vrot.slane %v1411_v40, 1  ;;  %v1418_v37 = vrot.slane %v1417_v52, 1  ;;  %v1424_v22 = vrot.slane %v1423_v29, 1 }
 0x11f   : > { %v1389_v34 = vadd.f32 %v1388_v38, %v1387_v63  ;;  %v1395_v27 = vadd.f32 %v1394_v55, %v1393_v3  ;;  %v1401_v5 = vadd.f32 %v1400_v1, %v1399_v60  ;;  %v1459_v30 = vmul.f32 %v1452_v32, %v2291_v13  ;;  %v1545_v38 = vld [vmem:[%s2270_s26 + $0x2d8] sm:$0xff] }
 0x120   : > { %v1407_v50 = vadd.f32 %v1406_v33, %v1405_v16  ;;  %v1413_v56 = vadd.f32 %v1412_v48, %v1411_v40  ;;  %v1419_v21 = vadd.f32 %v1418_v37, %v1417_v52  ;;  %v1425_v42 = vadd.f32 %v1424_v22, %v1423_v29 }
 0x121   : > { %v1433_v31 = vrot.slane %v1395_v27, 7  ;;  %v1434_v47 = vrot.slane %v1401_v5, 6  ;;  %v1460_v54 = vmul.f32 %v1453_v44, %v2293_v14  ;;  %v1468_v2 = vmul.f32 %v1461_v23, %v2295_v15 }
 0x122   : > { %v1435_v57 = vrot.slane %v1407_v50, 5  ;;  %v1436_v35 = vrot.slane %v1413_v56, 4  ;;  %v1437_v10 = vrot.slane %v1419_v21, 3  ;;  %v1438_v0 = vrot.slane %v1425_v42, 2 }
 0x123   : > { %v1439_v58 = vsel %vm351_vm0, %v1389_v34, %v1433_v31  ;;  %v1469_v39 = vmul.f32 %v1462_v61, %v2298_v17  ;;  %v1470_v46 = vmul.f32 %v1463_v36, %v2300_v18  ;;  %v1471_v60 = vmul.f32 %v1464_v59, %v2302_v19  ;;  %v1546_v34 = vld [vmem:[%s2270_s26 + $0x2e0] sm:$0xff] }
 0x124   : > { %v1440_v63 = vsel %vm353_vm1, %v1434_v47, %v1435_v57  ;;  %v1442_v3 = vsel %vm357_vm2, %v1436_v35, %v1437_v10  ;;  %v1472_v53 = vmul.f32 %v1465_v49, %v2304_v20  ;;  %v1473_v40 = vmul.f32 %v1466_v4, %v2309_v24  ;;  %v1548_v47 = vld [vmem:[%s2270_s26 + $0x2f0] sm:$0xff] }
 0x125   : > { %v1441_v11 = vsel %vm355_vm3, %v1439_v58, %v1440_v63  ;;  %v1443_v16 = vsel %vm359_vm4, %v1442_v3, %v1438_v0  ;;  %v1474_v52 = vmul.f32 %v1467_v51, %v2311_v25  ;;  %v1475_v1 = vadd.f32 %v1468_v2, %v2825_v62  ;;  %v1549_v51 = vld [vmem:[%s2270_s26 + $0x2f8] sm:$0xff] }
 0x126   : > { %v1444_v55 = vsel %vm361_vm5, %v1441_v11, %v1443_v16  ;;  %v1476_v29 = vadd.f32 %v1469_v39, %v2829_v28  ;;  %v1477_v32 = vadd.f32 %v1470_v46, %v1456_v43  ;;  %v1478_v33 = vadd.f32 %v1471_v60, %v1457_v26  ;;  %v1547_v43 = vld [vmem:[%s2270_s26 + $0x2e8] sm:$0xff]  ;;  %v1550_v60 = vld [vmem:[%s2270_s26 + $0x300] sm:$0xff] }
 0x127   : > { %1446 = vst.msk [vmem:[%s2388_s6 + $0x4d] sm:$0x7f] %vm2353_vm6, %v1444_v55  ;;  %v1479_v48 = vadd.f32 %v1472_v53, %v1458_v41  ;;  %v1480_v37 = vadd.f32 %v1473_v40, %v1459_v30  ;;  %v1481_v44 = vadd.f32 %v1474_v52, %v1460_v54  ;;  %v1482_v27 = vrot.slane %v1475_v1, 4 }
 0x128   : > { %v1488_v5 = vrot.slane %v1476_v29, 4  ;;  %v1494_v22 = vrot.slane %v1477_v32, 4  ;;  %v2868_v23 = vmul.f32 %v1545_v38, %v2281_v6  ;;  %v1500_v62 = vrot.slane %v1478_v33, 4 }
 0x129   : > { %v1506_v50 = vrot.slane %v1479_v48, 4  ;;  %v1512_v28 = vrot.slane %v1480_v37, 4  ;;  %v1518_v56 = vrot.slane %v1481_v44, 4  ;;  %v1483_v21 = vadd.f32 %v1482_v27, %v1475_v1  ;;  %v1551_v1 = vld [vmem:[%s2270_s26 + $0x308] sm:$0xff]  ;;  %v1560_v27 = vld [vmem:[%s2270_s26 + $0x5f0] sm:$0xff] }
 0x12a   : > { %v1489_v61 = vadd.f32 %v1488_v5, %v1476_v29  ;;  %v1495_v26 = vadd.f32 %v1494_v22, %v1477_v32  ;;  %v2872_v41 = vmul.f32 %v1546_v34, %v2283_v7  ;;  %v1501_v30 = vadd.f32 %v1500_v62, %v1478_v33  ;;  %v1561_v5 = vld [vmem:[%s2270_s26 + $0x5f8] sm:$0xff]  ;;  %v1562_v22 = vld [vmem:[%s2270_s26 + $0x600] sm:$0xff] }
 0x12b   : > { %v1507_v36 = vadd.f32 %v1506_v50, %v1479_v48  ;;  %v1513_v42 = vadd.f32 %v1512_v28, %v1480_v37  ;;  %v1519_v31 = vadd.f32 %v1518_v56, %v1481_v44  ;;  %v1484_v54 = vrot.slane %v1483_v21, 2  ;;  %v1563_v56 = vld [vmem:[%s2270_s26 + $0x608] sm:$0xff] }
 0x12c   : > { %v1490_v6 = vrot.slane %v1489_v61, 2  ;;  %v1496_v59 = vrot.slane %v1495_v26, 2  ;;  %v1554_v49 = vmul.f32 %v1547_v43, %v2285_v8  ;;  %v1502_v57 = vrot.slane %v1501_v30, 2  ;;  %v1564_v43 = vld [vmem:[%s2270_s26 + $0x610] sm:$0xff] }
 0x12d   : > { %v1508_v35 = vrot.slane %v1507_v36, 2  ;;  %v1514_v10 = vrot.slane %v1513_v42, 2  ;;  %v1520_v4 = vrot.slane %v1519_v31, 2  ;;  %v1485_v2 = vadd.f32 %v1484_v54, %v1483_v21 }
 0x12e   : > { %v1491_v0 = vadd.f32 %v1490_v6, %v1489_v61  ;;  %v1497_v7 = vadd.f32 %v1496_v59, %v1495_v26  ;;  %v1555_v58 = vmul.f32 %v1548_v47, %v2287_v9  ;;  %v1503_v39 = vadd.f32 %v1502_v57, %v1501_v30  ;;  %v1559_v9 = vld [vmem:[%s2270_s26 + $0x5e8] sm:$0xff] }
 0x12f   : > { %v1509_v46 = vadd.f32 %v1508_v35, %v1507_v36  ;;  %v1515_v63 = vadd.f32 %v1514_v10, %v1513_v42  ;;  %v1521_v3 = vadd.f32 %v1520_v4, %v1519_v31  ;;  %v1486_v53 = vrot.slane %v1485_v2, 1  ;;  %v1565_v36 = vld [vmem:[%s2270_s26 + $0x618] sm:$0xff]  ;;  %s1985_s26 = scalar_lea.hbm %s1984_s3, 98 }
 0x130   : > { %v1492_v11 = vrot.slane %v1491_v0, 1  ;;  %v1498_v8 = vrot.slane %v1497_v7, 1  ;;  %v1556_v16 = vmul.f32 %v1549_v51, %v2289_v12  ;;  %v1504_v40 = vrot.slane %v1503_v39, 1  ;;  %p1986_p2 = scmp.ne.s32.totalorder %s1984_s3, %s1985_s26  ;;  %p1991_p0 = scmp.lt.s32.totalorder %s1989_s23, %s1985_s26 }
 0x131   : > { %v1510_v52 = vrot.slane %v1509_v46, 1  ;;  %v1516_v38 = vrot.slane %v1515_v63, 1  ;;  %v1522_v55 = vrot.slane %v1521_v3, 1  ;;  %v1487_v29 = vadd.f32 %v1486_v53, %v1485_v2 }
 0x132   : > { %v1493_v32 = vadd.f32 %v1492_v11, %v1491_v0  ;;  %v1499_v33 = vadd.f32 %v1498_v8, %v1497_v7  ;;  %v1557_v48 = vmul.f32 %v1550_v60, %v2291_v13  ;;  %v1505_v37 = vadd.f32 %v1504_v40, %v1503_v39  ;;  %p1987_p6 = pnand %p1986_p2, %p2204_p9  ;;  %p1992_p4 = por %p1991_p0, %p1990_p11 }
 0x133   : > { %v1511_v44 = vadd.f32 %v1510_v52, %v1509_v46  ;;  %v1517_v34 = vadd.f32 %v1516_v38, %v1515_v63  ;;  %v1523_v12 = vadd.f32 %v1522_v55, %v1521_v3  ;;  %v1558_v28 = vmul.f32 %v1551_v1, %v2293_v14 }
 0x134   : > { %v1531_v62 = vrot.slane %v1493_v32, 7  ;;  %v1532_v50 = vrot.slane %v1499_v33, 6  ;;  %v1566_v21 = vmul.f32 %v1559_v9, %v2295_v15  ;;  %v1533_v61 = vrot.slane %v1505_v37, 5  ;;  %p1988_p8 = pneg %p1987_p6 }
 0x135   : > { %v1534_v26 = vrot.slane %v1511_v44, 4  ;;  %v1535_v30 = vrot.slane %v1517_v34, 3  ;;  %v1536_v13 = vrot.slane %v1523_v12, 2  ;;  %v1567_v31 = vmul.f32 %v1560_v27, %v2298_v17 }
 0x136   : > { %v1537_v42 = vsel %vm351_vm0, %v1487_v29, %v1531_v62  ;;  %v1568_v47 = vmul.f32 %v1561_v5, %v2300_v18  ;;  %v1569_v54 = vmul.f32 %v1562_v22, %v2302_v19  ;;  %v1538_v14 = vsel %vm353_vm1, %v1532_v50, %v1533_v61  ;;  %p1993_p5 = pnand %p1992_p4, %p1988_p8 }
 0x137   : > { %v1540_v6 = vsel %vm357_vm2, %v1534_v26, %v1535_v30  ;;  %v1570_v15 = vmul.f32 %v1563_v56, %v2304_v20  ;;  %v1571_v59 = vmul.f32 %v1564_v43, %v2309_v24  ;;  %v1539_v57 = vsel %vm355_vm3, %v1537_v42, %v1538_v14 }
 0x138   : > { %v1541_v35 = vsel %vm359_vm4, %v1540_v6, %v1536_v13  ;;  %v1572_v10 = vmul.f32 %v1565_v36, %v2311_v25  ;;  %v1573_v17 = vadd.f32 %v1566_v21, %v2868_v23  ;;  %v1574_v19 = vadd.f32 %v1567_v31, %v2872_v41 }
 0x139   : > { %v1542_v18 = vsel %vm361_vm5, %v1539_v57, %v1541_v35  ;;  %v1575_v4 = vadd.f32 %v1568_v47, %v1554_v49  ;;  %v1576_v51 = vadd.f32 %v1569_v54, %v1555_v58  ;;  %v1577_v20 = vadd.f32 %v1570_v15, %v1556_v16 }
 0x13a   : > { %1544 = vst.msk [vmem:[%s2388_s6 + $0x54] sm:$0x7f] %vm2353_vm6, %v1542_v18  ;;  %v1578_v24 = vadd.f32 %v1571_v59, %v1557_v48  ;;  %v1579_v2 = vadd.f32 %v1572_v10, %v1558_v28  ;;  %v1580_v0 = vrot.slane %v1573_v17, 4  ;;  %v1586_v7 = vrot.slane %v1574_v19, 4 }
 0x13b   : > { %v1592_v39 = vrot.slane %v1575_v4, 4  ;;  %v1598_v25 = vrot.slane %v1576_v51, 4  ;;  %v1604_v23 = vrot.slane %v1577_v20, 4 }
 0x13c   : > { %v1581_v46 = vadd.f32 %v1580_v0, %v1573_v17  ;;  %v1610_v63 = vrot.slane %v1578_v24, 4  ;;  %v1616_v3 = vrot.slane %v1579_v2, 4  ;;  %v1587_v60 = vadd.f32 %v1586_v7, %v1574_v19 }
 0x13d   : > { %v1593_v41 = vadd.f32 %v1592_v39, %v1575_v4  ;;  %v1599_v49 = vadd.f32 %v1598_v25, %v1576_v51  ;;  %v1605_v53 = vadd.f32 %v1604_v23, %v1577_v20 }
 0x13e   : > { %v1582_v58 = vrot.slane %v1581_v46, 2  ;;  %v1611_v11 = vadd.f32 %v1610_v63, %v1578_v24  ;;  %v1617_v8 = vadd.f32 %v1616_v3, %v1579_v2  ;;  %v1588_v16 = vrot.slane %v1587_v60, 2 }
 0x13f   : > { %v1594_v40 = vrot.slane %v1593_v41, 2  ;;  %v1600_v52 = vrot.slane %v1599_v49, 2  ;;  %v1606_v55 = vrot.slane %v1605_v53, 2 }
 0x140   : > { %v1583_v38 = vadd.f32 %v1582_v58, %v1581_v46  ;;  %v1612_v1 = vrot.slane %v1611_v11, 2  ;;  %v1618_v9 = vrot.slane %v1617_v8, 2  ;;  %v1589_v29 = vadd.f32 %v1588_v16, %v1587_v60 }
 0x141   : > { %v1595_v32 = vadd.f32 %v1594_v40, %v1593_v41  ;;  %v1601_v33 = vadd.f32 %v1600_v52, %v1599_v49  ;;  %v1607_v37 = vadd.f32 %v1606_v55, %v1605_v53 }
 0x142   : > { %v1584_v48 = vrot.slane %v1583_v38, 1  ;;  %v1613_v44 = vadd.f32 %v1612_v1, %v1611_v11  ;;  %v1619_v34 = vadd.f32 %v1618_v9, %v1617_v8  ;;  %v1590_v12 = vrot.slane %v1589_v29, 1 }
 0x143   : > { %v1596_v27 = vrot.slane %v1595_v32, 1  ;;  %v1602_v5 = vrot.slane %v1601_v33, 1  ;;  %v1608_v22 = vrot.slane %v1607_v37, 1 }
 0x144   : > { %v1614_v62 = vrot.slane %v1613_v44, 1  ;;  %v1620_v50 = vrot.slane %v1619_v34, 1  ;;  %v1585_v28 = vadd.f32 %v1584_v48, %v1583_v38  ;;  %v1591_v56 = vadd.f32 %v1590_v12, %v1589_v29 }
 0x145   : > { %v1597_v43 = vadd.f32 %v1596_v27, %v1595_v32  ;;  %v1603_v21 = vadd.f32 %v1602_v5, %v1601_v33  ;;  %v1609_v61 = vadd.f32 %v1608_v22, %v1607_v37 }
 0x146   : > { %v1615_v26 = vadd.f32 %v1614_v62, %v1613_v44  ;;  %v1621_v30 = vadd.f32 %v1620_v50, %v1619_v34  ;;  %v1629_v13 = vrot.slane %v1591_v56, 7 }
 0x147   : > { %v1630_v36 = vrot.slane %v1597_v43, 6  ;;  %v1631_v42 = vrot.slane %v1603_v21, 5  ;;  %v1632_v31 = vrot.slane %v1609_v61, 4 }
 0x148   : > { %v1633_v47 = vrot.slane %v1615_v26, 3  ;;  %v1634_v54 = vrot.slane %v1621_v30, 2  ;;  %v1635_v14 = vsel %vm351_vm0, %v1585_v28, %v1629_v13 }
 0x149   : > { %v1636_v6 = vsel %vm353_vm1, %v1630_v36, %v1631_v42 }
 0x14a   : > { %v1637_v15 = vsel %vm355_vm3, %v1635_v14, %v1636_v6  ;;  %v1638_v59 = vsel %vm357_vm2, %v1632_v31, %v1633_v47 }
 0x14b   : > { %v1639_v57 = vsel %vm359_vm4, %v1638_v59, %v1634_v54 }
 0x14c   : > { %v1640_v35 = vsel %vm361_vm5, %v1637_v15, %v1639_v57 }
 0x14d   : > { %1642 = vst.msk [vmem:[%s2388_s6 + $0x5b] sm:$0x7f] %vm2353_vm6, %v1640_v35 }
 0x14e   : > { %1996 = shalt.err (!%p1993_p5)
}
 0x14f   : > { %1802 = dma.vmem_to_hbm [thread:$0]  (%p2204_p9), %s1661_s9, 1568, %s1663_s25, %s1644_s24  }
 0x150 PF: > { %p1816_p7 = scmp.ge.s32.totalorder %s2095_s19, 2  ;;  %s1674_s27 = sand.u32 1, %s2067_s12  }
 0x151   : > { %s1675_s6 = scalar_lea.sflag [#allocation4], %s1674_s27 }
 0x152   : > { %p1812_p10 = pnand %p1816_p7, %p2214_p13 }
 0x154   : > { %p1813_p12 = pneg %p1812_p10 }
 0x156   : > { %2050 = dma.done.wait (%p1813_p12), %s1675_s6, 1568  }
 0x157   : > { %2052 = vsyncadd (%p1813_p12), %s1675_s6, 4294965728  ;;  %s21_s19 = sadd.s32 1, %s2095_s19   ;;  %s2993_s15 = sld [smem:[#allocation11_spill]] }
 0x158   : > { %p18_p1 = scmp.ge.s32.totalorder %s21_s19, 6   ;;  %s2994_s17 = sld [smem:[#allocation12_spill]] }
 0x159   : > { %s2995_s29 = sld [smem:[#allocation13_spill]]  ;;  %s2996_s9 = smov %s2059_s10 }
 0x15a   : > { %s2997_s10 = smov %s2063_s11  ;;  %s2998_s11 = smov %s2244_s22 }
 0x15b   : > { %s2999_s12 = smov %s2071_s13  ;;  %s3000_s13 = smov %s2075_s14 }
 0x15c   : > { %s3001_s14 = smov %s2220_s5  ;;  %s3002_s16 = smov %s2091_s18 }
 0x15d   :  { %20 = sbr.rel (!%p18_p1) target bundleno = 13 (0xd), region = 86 }
 0x15f   : > { %s3003_s18 = smov %s2995_s29 }
 0x162   :  { %1681 = vsyncpa [#allocation3], 1 }
 0x163   :  { %1683 = vsyncpa [#allocation3 + $0x1], 1 }
 0x164   :  { %1684 = vsyncpa [#allocation6], 1 }
 0x165   :  { %1686 = vsyncpa [#allocation6 + $0x1], 1 }
 0x166   :  { %1687 = vsyncpa [#allocation4], 1 }
 0x167   :  { %1689 = vsyncpa [#allocation4 + $0x1], 1 }

</bundles_post_ra>
